<compile_context>
chip_gen: v5e
topology: v5e:2x2
jax: 0.10.0
libtpu: 0.0.40
codegen_flags: <defaults>
</compile_context>

<pallas_src>
import functools

import jax
import jax.numpy as jnp
from jax.experimental import pallas as pl
from jax.experimental.pallas import tpu as pltpu


def _ddc_kernel(x_ref, kd_ref, bd_ref, pw_ref, scale_ref, shift_ref, o_ref,
                *, s, c_in, c_out, hp, wpool):
    # x_ref    : (C_in, Hp, s, Wp, s)  one batch element (batch dim squeezed)
    # kd_ref   : (3, 3, C_in, 1, 1)    depthwise 3x3 weights
    # bd_ref   : (C_in, 1, 1)          depthwise bias
    # pw_ref   : (C_in, C_out, 1, 1)   pointwise weights, (in, out) order
    # scale_ref: (C_out, 1, 1)         folded BN scale
    # shift_ref: (C_out, 1, 1)         folded BN shift (incl. pointwise bias)
    # o_ref    : (C_out, Hp, Wp)
    v = x_ref[...].astype(jnp.float32)                     # (C_in, Hp, s, Wp, s)

    # --- MaxPool2d(s, s, ceil_mode=True): reduce the two stride-s axes ---
    pooled = jnp.max(v, axis=4)                            # (C_in, Hp, s, Wp)
    pooled = jnp.max(pooled, axis=2)                       # (C_in, Hp, Wp)

    # --- depthwise 3x3, padding=1: zero-pad spatially, 9 shifted MACs ---
    zcol = jnp.zeros((c_in, hp, 1), jnp.float32)
    p = jnp.concatenate([zcol, pooled, zcol], axis=2)      # (C_in, Hp, Wp+2)
    zrow = jnp.zeros((c_in, 1, wpool + 2), jnp.float32)
    p = jnp.concatenate([zrow, p, zrow], axis=1)           # (C_in, Hp+2, Wp+2)

    dw = None
    for di in range(3):
        for dj in range(3):
            tap = p[:, di:di + hp, dj:dj + wpool] * kd_ref[di, dj].astype(jnp.float32)
            dw = tap if dw is None else dw + tap
    dw = dw + bd_ref[...].astype(jnp.float32)              # (C_in, Hp, Wp)

    # --- pointwise 1x1 conv: contract over C_in with broadcasted MACs ---
    acc = None
    for ci in range(c_in):
        term = dw[ci][None, :, :] * pw_ref[ci].astype(jnp.float32)  # (C_out, Hp, Wp)
        acc = term if acc is None else acc + term

    # --- folded BatchNorm(eval) + pointwise bias, then ReLU ---
    out = acc * scale_ref[...] + shift_ref[...]
    o_ref[...] = jnp.maximum(out, 0.0).astype(o_ref.dtype)


def depth_down_connect_forward(x, s, w_dw, b_dw, w_pw, b_pw,
                               bn_gamma, bn_beta, bn_mean, bn_var, eps=1e-5):
    """x: (N, C_in, H, W) NCHW. Returns (N, C_out, ceil(H/s), ceil(W/s)) NCHW."""
    N, C_in, H, W = x.shape
    C_out = w_pw.shape[0]
    Hp = -(-H // s)
    Wp = -(-W // s)
    pad_h = Hp * s - H
    pad_w = Wp * s - W
    if pad_h or pad_w:
        # ceil_mode=True: partial windows take the max over valid elements only.
        x = jnp.pad(x, ((0, 0), (0, 0), (0, pad_h), (0, pad_w)),
                    constant_values=-jnp.inf)
    # Free (contiguous, row-major) reshape: no transpose / no extra HBM pass.
    x6 = x.reshape(N, C_in, Hp, s, Wp, s)

    # Tiny weight re-shapes (negligible): trailing (1,1) dims make every
    # per-channel factor a simple minor-dim broadcast inside the kernel.
    kd = jnp.transpose(w_dw[:, 0, :, :], (1, 2, 0)).reshape(3, 3, C_in, 1, 1)
    bd = b_dw.reshape(C_in, 1, 1)
    pw = jnp.transpose(w_pw[:, :, 0, 0], (1, 0)).reshape(C_in, C_out, 1, 1)
    scale = bn_gamma / jnp.sqrt(bn_var + eps)
    shift = (b_pw - bn_mean) * scale + bn_beta
    scale = scale.reshape(C_out, 1, 1).astype(jnp.float32)
    shift = shift.reshape(C_out, 1, 1).astype(jnp.float32)

    kernel = functools.partial(_ddc_kernel, s=s, c_in=C_in, c_out=C_out,
                               hp=Hp, wpool=Wp)
    out = pl.pallas_call(
        kernel,
        out_shape=jax.ShapeDtypeStruct((N, C_out, Hp, Wp), x.dtype),
        grid_spec=pltpu.PrefetchScalarGridSpec(
            num_scalar_prefetch=0,
            grid=(N,),
            in_specs=[
                pl.BlockSpec((None, C_in, Hp, s, Wp, s),
                             lambda n: (n, 0, 0, 0, 0, 0)),
                pl.BlockSpec((3, 3, C_in, 1, 1), lambda n: (0, 0, 0, 0, 0)),
                pl.BlockSpec((C_in, 1, 1), lambda n: (0, 0, 0)),
                pl.BlockSpec((C_in, C_out, 1, 1), lambda n: (0, 0, 0, 0)),
                pl.BlockSpec((C_out, 1, 1), lambda n: (0, 0, 0)),
                pl.BlockSpec((C_out, 1, 1), lambda n: (0, 0, 0)),
            ],
            out_specs=pl.BlockSpec((None, C_out, Hp, Wp),
                                   lambda n: (n, 0, 0, 0)),
        ),
        compiler_params=pltpu.CompilerParams(
            dimension_semantics=("parallel",)),
    )(x6, kd, bd, pw, scale, shift)
    return out


def depth_down_connect_reference(x, s, w_dw, b_dw, w_pw, b_pw,
                                 bn_gamma, bn_beta, bn_mean, bn_var, eps=1e-5):
    """Pure-JAX (lax conv / reduce_window) reference for validation."""
    N, C_in, H, W = x.shape
    Hp = -(-H // s)
    Wp = -(-W // s)
    pad_h = Hp * s - H
    pad_w = Wp * s - W
    pooled = jax.lax.reduce_window(
        x, -jnp.inf, jax.lax.max,
        window_dimensions=(1, 1, s, s), window_strides=(1, 1, s, s),
        padding=((0, 0), (0, 0), (0, pad_h), (0, pad_w)))
    dw = jax.lax.conv_general_dilated(
        pooled, w_dw, window_strides=(1, 1), padding=((1, 1), (1, 1)),
        dimension_numbers=("NCHW", "OIHW", "NCHW"), feature_group_count=C_in)
    dw = dw + b_dw.reshape(1, C_in, 1, 1)
    pwc = jax.lax.conv_general_dilated(
        dw, w_pw, window_strides=(1, 1), padding=((0, 0), (0, 0)),
        dimension_numbers=("NCHW", "OIHW", "NCHW"))
    pwc = pwc + b_pw.reshape(1, -1, 1, 1)
    inv = (bn_gamma / jnp.sqrt(bn_var + eps)).reshape(1, -1, 1, 1)
    bn = (pwc - bn_mean.reshape(1, -1, 1, 1)) * inv + bn_beta.reshape(1, -1, 1, 1)
    return jnp.maximum(bn, 0.0)


if __name__ == "__main__":
    # depth_down_connect(s=2, in_ch=4, out_ch=8) on a (2, 4, 16, 16) input.
    N, C_in, C_out, H, W, s = 2, 4, 8, 16, 16, 2

    key = jax.random.PRNGKey(0)
    ks = jax.random.split(key, 9)
    x = jax.random.normal(ks[0], (N, C_in, H, W), dtype=jnp.float32)
    w_dw = jax.random.normal(ks[1], (C_in, 1, 3, 3), dtype=jnp.float32) * 0.2
    b_dw = jax.random.normal(ks[2], (C_in,), dtype=jnp.float32) * 0.1
    w_pw = jax.random.normal(ks[3], (C_out, C_in, 1, 1), dtype=jnp.float32) * 0.2
    b_pw = jax.random.normal(ks[4], (C_out,), dtype=jnp.float32) * 0.1
    bn_gamma = 1.0 + 0.1 * jax.random.normal(ks[5], (C_out,), dtype=jnp.float32)
    bn_beta = 0.1 * jax.random.normal(ks[6], (C_out,), dtype=jnp.float32)
    bn_mean = 0.1 * jax.random.normal(ks[7], (C_out,), dtype=jnp.float32)
    bn_var = 0.5 + jnp.abs(jax.random.normal(ks[8], (C_out,), dtype=jnp.float32)) * 0.5

    out = depth_down_connect_forward(x, s, w_dw, b_dw, w_pw, b_pw,
                                     bn_gamma, bn_beta, bn_mean, bn_var)
    out = jax.block_until_ready(out)

    ref = depth_down_connect_reference(x, s, w_dw, b_dw, w_pw, b_pw,
                                       bn_gamma, bn_beta, bn_mean, bn_var)
    assert out.shape == (N, C_out, H // s, W // s)
    assert jnp.allclose(out, ref, atol=1e-4, rtol=1e-4), "mismatch vs reference"

    print("KERNEL_OK")
</pallas_src>

<mosaic_0001>
module attributes {stable_mosaic.version = 11 : i64} {
  func.func @_ddc_kernel(%arg0: i32, %arg1: memref<1x4x8x2x8x2xf32, #tpu.memory_space<vmem>>, %arg2: memref<3x3x4x1x1xf32, #tpu.memory_space<vmem>>, %arg3: memref<4x1x1xf32, #tpu.memory_space<vmem>>, %arg4: memref<4x8x1x1xf32, #tpu.memory_space<vmem>>, %arg5: memref<8x1x1xf32, #tpu.memory_space<vmem>>, %arg6: memref<8x1x1xf32, #tpu.memory_space<vmem>>, %arg7: memref<1x8x8x8xf32, #tpu.memory_space<vmem>>) attributes {dimension_semantics = [#tpu.dimension_semantics<parallel>], iteration_bounds = array<i64: 2>, scalar_prefetch = 0 : i64, scratch_operands = 0 : i64, tpu.core_type = #tpu.core_type<tc>, window_params = [{transform_indices = @transform_0, window_bounds = array<i64: 1, 4, 8, 2, 8, 2>}, {pipeline_mode = #tpu.pipeline_mode<synchronous>, transform_indices = @transform_1, window_bounds = array<i64: 3, 3, 4, 1, 1>}, {pipeline_mode = #tpu.pipeline_mode<synchronous>, transform_indices = @transform_2, window_bounds = array<i64: 4, 1, 1>}, {pipeline_mode = #tpu.pipeline_mode<synchronous>, transform_indices = @transform_3, window_bounds = array<i64: 4, 8, 1, 1>}, {pipeline_mode = #tpu.pipeline_mode<synchronous>, transform_indices = @transform_4, window_bounds = array<i64: 8, 1, 1>}, {pipeline_mode = #tpu.pipeline_mode<synchronous>, transform_indices = @transform_5, window_bounds = array<i64: 8, 1, 1>}, {transform_indices = @transform_6, window_bounds = array<i64: 1, 8, 8, 8>}]} {
    %c0 = arith.constant 0 : index
    %c0_0 = arith.constant 0 : index
    %c0_1 = arith.constant 0 : index
    %c0_2 = arith.constant 0 : index
    %c0_3 = arith.constant 0 : index
    %c0_4 = arith.constant 0 : index
    %0 = vector.load %arg1[%c0, %c0_0, %c0_1, %c0_2, %c0_3, %c0_4] : memref<1x4x8x2x8x2xf32, #tpu.memory_space<vmem>>, vector<1x4x8x2x8x2xf32>
    %1 = vector.shape_cast %0 : vector<1x4x8x2x8x2xf32> to vector<4x8x2x8x2xf32>
    %cst = arith.constant dense<0xFF800000> : vector<4x8x2x8xf32>
    %2 = vector.multi_reduction <maximumf>, %1, %cst [4] : vector<4x8x2x8x2xf32> to vector<4x8x2x8xf32>
    %cst_5 = arith.constant dense<0xFF800000> : vector<4x8x8xf32>
    %3 = vector.multi_reduction <maximumf>, %2, %cst_5 [2] : vector<4x8x2x8xf32> to vector<4x8x8xf32>
    %cst_6 = arith.constant 0.000000e+00 : f32
    %4 = vector.broadcast %cst_6 : f32 to vector<4x8x1xf32>
    %5 = tpu.concatenate %4, %3, %4 in 2 : vector<4x8x1xf32>, vector<4x8x8xf32>, vector<4x8x1xf32> -> vector<4x8x10xf32>
    %cst_7 = arith.constant 0.000000e+00 : f32
    %6 = vector.broadcast %cst_7 : f32 to vector<4x1x10xf32>
    %7 = tpu.concatenate %6, %5, %6 in 1 : vector<4x1x10xf32>, vector<4x8x10xf32>, vector<4x1x10xf32> -> vector<4x10x10xf32>
    %8 = vector.extract_strided_slice %7 {offsets = [0, 0, 0], sizes = [4, 8, 8], strides = [1, 1, 1]} : vector<4x10x10xf32> to vector<4x8x8xf32>
    %c0_8 = arith.constant 0 : index
    %c0_9 = arith.constant 0 : index
    %c0_10 = arith.constant 0 : index
    %c0_11 = arith.constant 0 : index
    %c0_12 = arith.constant 0 : index
    %9 = vector.load %arg2[%c0_8, %c0_9, %c0_10, %c0_11, %c0_12] : memref<3x3x4x1x1xf32, #tpu.memory_space<vmem>>, vector<1x1x4x1x1xf32>
    %10 = vector.shape_cast %9 : vector<1x1x4x1x1xf32> to vector<4x1x1xf32>
    %11 = vector.broadcast %10 : vector<4x1x1xf32> to vector<4x8x8xf32>
    %12 = arith.mulf %8, %11 : vector<4x8x8xf32>
    %13 = vector.extract_strided_slice %7 {offsets = [0, 0, 1], sizes = [4, 8, 8], strides = [1, 1, 1]} : vector<4x10x10xf32> to vector<4x8x8xf32>
    %c0_13 = arith.constant 0 : index
    %c1 = arith.constant 1 : index
    %c0_14 = arith.constant 0 : index
    %c0_15 = arith.constant 0 : index
    %c0_16 = arith.constant 0 : index
    %14 = vector.load %arg2[%c0_13, %c1, %c0_14, %c0_15, %c0_16] : memref<3x3x4x1x1xf32, #tpu.memory_space<vmem>>, vector<1x1x4x1x1xf32>
    %15 = vector.shape_cast %14 : vector<1x1x4x1x1xf32> to vector<4x1x1xf32>
    %16 = vector.broadcast %15 : vector<4x1x1xf32> to vector<4x8x8xf32>
    %17 = arith.mulf %13, %16 : vector<4x8x8xf32>
    %18 = arith.addf %12, %17 : vector<4x8x8xf32>
    %19 = vector.extract_strided_slice %7 {offsets = [0, 0, 2], sizes = [4, 8, 8], strides = [1, 1, 1]} : vector<4x10x10xf32> to vector<4x8x8xf32>
    %c0_17 = arith.constant 0 : index
    %c2 = arith.constant 2 : index
    %c0_18 = arith.constant 0 : index
    %c0_19 = arith.constant 0 : index
    %c0_20 = arith.constant 0 : index
    %20 = vector.load %arg2[%c0_17, %c2, %c0_18, %c0_19, %c0_20] : memref<3x3x4x1x1xf32, #tpu.memory_space<vmem>>, vector<1x1x4x1x1xf32>
    %21 = vector.shape_cast %20 : vector<1x1x4x1x1xf32> to vector<4x1x1xf32>
    %22 = vector.broadcast %21 : vector<4x1x1xf32> to vector<4x8x8xf32>
    %23 = arith.mulf %19, %22 : vector<4x8x8xf32>
    %24 = arith.addf %18, %23 : vector<4x8x8xf32>
    %25 = vector.extract_strided_slice %7 {offsets = [0, 1, 0], sizes = [4, 8, 8], strides = [1, 1, 1]} : vector<4x10x10xf32> to vector<4x8x8xf32>
    %c1_21 = arith.constant 1 : index
    %c0_22 = arith.constant 0 : index
    %c0_23 = arith.constant 0 : index
    %c0_24 = arith.constant 0 : index
    %c0_25 = arith.constant 0 : index
    %26 = vector.load %arg2[%c1_21, %c0_22, %c0_23, %c0_24, %c0_25] : memref<3x3x4x1x1xf32, #tpu.memory_space<vmem>>, vector<1x1x4x1x1xf32>
    %27 = vector.shape_cast %26 : vector<1x1x4x1x1xf32> to vector<4x1x1xf32>
    %28 = vector.broadcast %27 : vector<4x1x1xf32> to vector<4x8x8xf32>
    %29 = arith.mulf %25, %28 : vector<4x8x8xf32>
    %30 = arith.addf %24, %29 : vector<4x8x8xf32>
    %31 = vector.extract_strided_slice %7 {offsets = [0, 1, 1], sizes = [4, 8, 8], strides = [1, 1, 1]} : vector<4x10x10xf32> to vector<4x8x8xf32>
    %c1_26 = arith.constant 1 : index
    %c1_27 = arith.constant 1 : index
    %c0_28 = arith.constant 0 : index
    %c0_29 = arith.constant 0 : index
    %c0_30 = arith.constant 0 : index
    %32 = vector.load %arg2[%c1_26, %c1_27, %c0_28, %c0_29, %c0_30] : memref<3x3x4x1x1xf32, #tpu.memory_space<vmem>>, vector<1x1x4x1x1xf32>
    %33 = vector.shape_cast %32 : vector<1x1x4x1x1xf32> to vector<4x1x1xf32>
    %34 = vector.broadcast %33 : vector<4x1x1xf32> to vector<4x8x8xf32>
    %35 = arith.mulf %31, %34 : vector<4x8x8xf32>
    %36 = arith.addf %30, %35 : vector<4x8x8xf32>
    %37 = vector.extract_strided_slice %7 {offsets = [0, 1, 2], sizes = [4, 8, 8], strides = [1, 1, 1]} : vector<4x10x10xf32> to vector<4x8x8xf32>
    %c1_31 = arith.constant 1 : index
    %c2_32 = arith.constant 2 : index
    %c0_33 = arith.constant 0 : index
    %c0_34 = arith.constant 0 : index
    %c0_35 = arith.constant 0 : index
    %38 = vector.load %arg2[%c1_31, %c2_32, %c0_33, %c0_34, %c0_35] : memref<3x3x4x1x1xf32, #tpu.memory_space<vmem>>, vector<1x1x4x1x1xf32>
    %39 = vector.shape_cast %38 : vector<1x1x4x1x1xf32> to vector<4x1x1xf32>
    %40 = vector.broadcast %39 : vector<4x1x1xf32> to vector<4x8x8xf32>
    %41 = arith.mulf %37, %40 : vector<4x8x8xf32>
    %42 = arith.addf %36, %41 : vector<4x8x8xf32>
    %43 = vector.extract_strided_slice %7 {offsets = [0, 2, 0], sizes = [4, 8, 8], strides = [1, 1, 1]} : vector<4x10x10xf32> to vector<4x8x8xf32>
    %c2_36 = arith.constant 2 : index
    %c0_37 = arith.constant 0 : index
    %c0_38 = arith.constant 0 : index
    %c0_39 = arith.constant 0 : index
    %c0_40 = arith.constant 0 : index
    %44 = vector.load %arg2[%c2_36, %c0_37, %c0_38, %c0_39, %c0_40] : memref<3x3x4x1x1xf32, #tpu.memory_space<vmem>>, vector<1x1x4x1x1xf32>
    %45 = vector.shape_cast %44 : vector<1x1x4x1x1xf32> to vector<4x1x1xf32>
    %46 = vector.broadcast %45 : vector<4x1x1xf32> to vector<4x8x8xf32>
    %47 = arith.mulf %43, %46 : vector<4x8x8xf32>
    %48 = arith.addf %42, %47 : vector<4x8x8xf32>
    %49 = vector.extract_strided_slice %7 {offsets = [0, 2, 1], sizes = [4, 8, 8], strides = [1, 1, 1]} : vector<4x10x10xf32> to vector<4x8x8xf32>
    %c2_41 = arith.constant 2 : index
    %c1_42 = arith.constant 1 : index
    %c0_43 = arith.constant 0 : index
    %c0_44 = arith.constant 0 : index
    %c0_45 = arith.constant 0 : index
    %50 = vector.load %arg2[%c2_41, %c1_42, %c0_43, %c0_44, %c0_45] : memref<3x3x4x1x1xf32, #tpu.memory_space<vmem>>, vector<1x1x4x1x1xf32>
    %51 = vector.shape_cast %50 : vector<1x1x4x1x1xf32> to vector<4x1x1xf32>
    %52 = vector.broadcast %51 : vector<4x1x1xf32> to vector<4x8x8xf32>
    %53 = arith.mulf %49, %52 : vector<4x8x8xf32>
    %54 = arith.addf %48, %53 : vector<4x8x8xf32>
    %55 = vector.extract_strided_slice %7 {offsets = [0, 2, 2], sizes = [4, 8, 8], strides = [1, 1, 1]} : vector<4x10x10xf32> to vector<4x8x8xf32>
    %c2_46 = arith.constant 2 : index
    %c2_47 = arith.constant 2 : index
    %c0_48 = arith.constant 0 : index
    %c0_49 = arith.constant 0 : index
    %c0_50 = arith.constant 0 : index
    %56 = vector.load %arg2[%c2_46, %c2_47, %c0_48, %c0_49, %c0_50] : memref<3x3x4x1x1xf32, #tpu.memory_space<vmem>>, vector<1x1x4x1x1xf32>
    %57 = vector.shape_cast %56 : vector<1x1x4x1x1xf32> to vector<4x1x1xf32>
    %58 = vector.broadcast %57 : vector<4x1x1xf32> to vector<4x8x8xf32>
    %59 = arith.mulf %55, %58 : vector<4x8x8xf32>
    %60 = arith.addf %54, %59 : vector<4x8x8xf32>
    %c0_51 = arith.constant 0 : index
    %c0_52 = arith.constant 0 : index
    %c0_53 = arith.constant 0 : index
    %61 = vector.load %arg3[%c0_51, %c0_52, %c0_53] : memref<4x1x1xf32, #tpu.memory_space<vmem>>, vector<4x1x1xf32>
    %62 = vector.broadcast %61 : vector<4x1x1xf32> to vector<4x8x8xf32>
    %63 = arith.addf %60, %62 : vector<4x8x8xf32>
    %64 = vector.extract_strided_slice %63 {offsets = [0, 0, 0], sizes = [1, 8, 8], strides = [1, 1, 1]} : vector<4x8x8xf32> to vector<1x8x8xf32>
    %65 = vector.shape_cast %64 : vector<1x8x8xf32> to vector<8x8xf32>
    %66 = vector.shape_cast %65 : vector<8x8xf32> to vector<1x8x8xf32>
    %c0_54 = arith.constant 0 : index
    %c0_55 = arith.constant 0 : index
    %c0_56 = arith.constant 0 : index
    %c0_57 = arith.constant 0 : index
    %67 = vector.load %arg4[%c0_54, %c0_55, %c0_56, %c0_57] : memref<4x8x1x1xf32, #tpu.memory_space<vmem>>, vector<1x8x1x1xf32>
    %68 = vector.shape_cast %67 : vector<1x8x1x1xf32> to vector<8x1x1xf32>
    %69 = vector.broadcast %66 : vector<1x8x8xf32> to vector<8x8x8xf32>
    %70 = vector.broadcast %68 : vector<8x1x1xf32> to vector<8x8x8xf32>
    %71 = arith.mulf %69, %70 : vector<8x8x8xf32>
    %72 = vector.extract_strided_slice %63 {offsets = [1, 0, 0], sizes = [1, 8, 8], strides = [1, 1, 1]} : vector<4x8x8xf32> to vector<1x8x8xf32>
    %73 = vector.shape_cast %72 : vector<1x8x8xf32> to vector<8x8xf32>
    %74 = vector.shape_cast %73 : vector<8x8xf32> to vector<1x8x8xf32>
    %c1_58 = arith.constant 1 : index
    %c0_59 = arith.constant 0 : index
    %c0_60 = arith.constant 0 : index
    %c0_61 = arith.constant 0 : index
    %75 = vector.load %arg4[%c1_58, %c0_59, %c0_60, %c0_61] : memref<4x8x1x1xf32, #tpu.memory_space<vmem>>, vector<1x8x1x1xf32>
    %76 = vector.shape_cast %75 : vector<1x8x1x1xf32> to vector<8x1x1xf32>
    %77 = vector.broadcast %74 : vector<1x8x8xf32> to vector<8x8x8xf32>
    %78 = vector.broadcast %76 : vector<8x1x1xf32> to vector<8x8x8xf32>
    %79 = arith.mulf %77, %78 : vector<8x8x8xf32>
    %80 = arith.addf %71, %79 : vector<8x8x8xf32>
    %81 = vector.extract_strided_slice %63 {offsets = [2, 0, 0], sizes = [1, 8, 8], strides = [1, 1, 1]} : vector<4x8x8xf32> to vector<1x8x8xf32>
    %82 = vector.shape_cast %81 : vector<1x8x8xf32> to vector<8x8xf32>
    %83 = vector.shape_cast %82 : vector<8x8xf32> to vector<1x8x8xf32>
    %c2_62 = arith.constant 2 : index
    %c0_63 = arith.constant 0 : index
    %c0_64 = arith.constant 0 : index
    %c0_65 = arith.constant 0 : index
    %84 = vector.load %arg4[%c2_62, %c0_63, %c0_64, %c0_65] : memref<4x8x1x1xf32, #tpu.memory_space<vmem>>, vector<1x8x1x1xf32>
    %85 = vector.shape_cast %84 : vector<1x8x1x1xf32> to vector<8x1x1xf32>
    %86 = vector.broadcast %83 : vector<1x8x8xf32> to vector<8x8x8xf32>
    %87 = vector.broadcast %85 : vector<8x1x1xf32> to vector<8x8x8xf32>
    %88 = arith.mulf %86, %87 : vector<8x8x8xf32>
    %89 = arith.addf %80, %88 : vector<8x8x8xf32>
    %90 = vector.extract_strided_slice %63 {offsets = [3, 0, 0], sizes = [1, 8, 8], strides = [1, 1, 1]} : vector<4x8x8xf32> to vector<1x8x8xf32>
    %91 = vector.shape_cast %90 : vector<1x8x8xf32> to vector<8x8xf32>
    %92 = vector.shape_cast %91 : vector<8x8xf32> to vector<1x8x8xf32>
    %c3 = arith.constant 3 : index
    %c0_66 = arith.constant 0 : index
    %c0_67 = arith.constant 0 : index
    %c0_68 = arith.constant 0 : index
    %93 = vector.load %arg4[%c3, %c0_66, %c0_67, %c0_68] : memref<4x8x1x1xf32, #tpu.memory_space<vmem>>, vector<1x8x1x1xf32>
    %94 = vector.shape_cast %93 : vector<1x8x1x1xf32> to vector<8x1x1xf32>
    %95 = vector.broadcast %92 : vector<1x8x8xf32> to vector<8x8x8xf32>
    %96 = vector.broadcast %94 : vector<8x1x1xf32> to vector<8x8x8xf32>
    %97 = arith.mulf %95, %96 : vector<8x8x8xf32>
    %98 = arith.addf %89, %97 : vector<8x8x8xf32>
    %c0_69 = arith.constant 0 : index
    %c0_70 = arith.constant 0 : index
    %c0_71 = arith.constant 0 : index
    %99 = vector.load %arg5[%c0_69, %c0_70, %c0_71] : memref<8x1x1xf32, #tpu.memory_space<vmem>>, vector<8x1x1xf32>
    %100 = vector.broadcast %99 : vector<8x1x1xf32> to vector<8x8x8xf32>
    %101 = arith.mulf %98, %100 : vector<8x8x8xf32>
    %c0_72 = arith.constant 0 : index
    %c0_73 = arith.constant 0 : index
    %c0_74 = arith.constant 0 : index
    %102 = vector.load %arg6[%c0_72, %c0_73, %c0_74] : memref<8x1x1xf32, #tpu.memory_space<vmem>>, vector<8x1x1xf32>
    %103 = vector.broadcast %102 : vector<8x1x1xf32> to vector<8x8x8xf32>
    %104 = arith.addf %101, %103 : vector<8x8x8xf32>
    %cst_75 = arith.constant 0.000000e+00 : f32
    %105 = vector.broadcast %cst_75 : f32 to vector<8x8x8xf32>
    %106 = arith.maximumf %104, %105 : vector<8x8x8xf32>
    %c0_76 = arith.constant 0 : index
    %c0_77 = arith.constant 0 : index
    %c0_78 = arith.constant 0 : index
    %c0_79 = arith.constant 0 : index
    %107 = vector.load %arg7[%c0_76, %c0_77, %c0_78, %c0_79] : memref<1x8x8x8xf32, #tpu.memory_space<vmem>>, vector<1x8x8x8xf32>
    %108 = vector.shape_cast %107 : vector<1x8x8x8xf32> to vector<8x8x8xf32>
    %109 = vector.shape_cast %106 : vector<8x8x8xf32> to vector<1x8x8x8xf32>
    tpu.vector_store %arg7[%c0_76, %c0_77, %c0_78, %c0_79], %109 {strides = array<i32>} : memref<1x8x8x8xf32, #tpu.memory_space<vmem>>, vector<1x8x8x8xf32>,
    return
  }
  func.func @transform_0(%arg0: i32) -> (i32, i32, i32, i32, i32, i32) {
    %c0_i32 = arith.constant 0 : i32
    %c0_i32_0 = arith.constant 0 : i32
    %c0_i32_1 = arith.constant 0 : i32
    %c0_i32_2 = arith.constant 0 : i32
    %c0_i32_3 = arith.constant 0 : i32
    %c0_i32_4 = arith.constant 0 : i32
    return %arg0, %c0_i32, %c0_i32_0, %c0_i32_1, %c0_i32_2, %c0_i32_3 : i32, i32, i32, i32, i32, i32
  }
  func.func @transform_1(%arg0: i32) -> (i32, i32, i32, i32, i32) {
    %c0_i32 = arith.constant 0 : i32
    %c0_i32_0 = arith.constant 0 : i32
    %c0_i32_1 = arith.constant 0 : i32
    %c0_i32_2 = arith.constant 0 : i32
    %c0_i32_3 = arith.constant 0 : i32
    %c0_i32_4 = arith.constant 0 : i32
    return %c0_i32, %c0_i32_0, %c0_i32_1, %c0_i32_2, %c0_i32_3 : i32, i32, i32, i32, i32
  }
  func.func @transform_2(%arg0: i32) -> (i32, i32, i32) {
    %c0_i32 = arith.constant 0 : i32
    %c0_i32_0 = arith.constant 0 : i32
    %c0_i32_1 = arith.constant 0 : i32
    %c0_i32_2 = arith.constant 0 : i32
    return %c0_i32, %c0_i32_0, %c0_i32_1 : i32, i32, i32
  }
  func.func @transform_3(%arg0: i32) -> (i32, i32, i32, i32) {
    %c0_i32 = arith.constant 0 : i32
    %c0_i32_0 = arith.constant 0 : i32
    %c0_i32_1 = arith.constant 0 : i32
    %c0_i32_2 = arith.constant 0 : i32
    %c0_i32_3 = arith.constant 0 : i32
    return %c0_i32, %c0_i32_0, %c0_i32_1, %c0_i32_2 : i32, i32, i32, i32
  }
  func.func @transform_4(%arg0: i32) -> (i32, i32, i32) {
    %c0_i32 = arith.constant 0 : i32
    %c0_i32_0 = arith.constant 0 : i32
    %c0_i32_1 = arith.constant 0 : i32
    %c0_i32_2 = arith.constant 0 : i32
    return %c0_i32, %c0_i32_0, %c0_i32_1 : i32, i32, i32
  }
  func.func @transform_5(%arg0: i32) -> (i32, i32, i32) {
    %c0_i32 = arith.constant 0 : i32
    %c0_i32_0 = arith.constant 0 : i32
    %c0_i32_1 = arith.constant 0 : i32
    %c0_i32_2 = arith.constant 0 : i32
    return %c0_i32, %c0_i32_0, %c0_i32_1 : i32, i32, i32
  }
  func.func @transform_6(%arg0: i32) -> (i32, i32, i32, i32) {
    %c0_i32 = arith.constant 0 : i32
    %c0_i32_0 = arith.constant 0 : i32
    %c0_i32_1 = arith.constant 0 : i32
    %c0_i32_2 = arith.constant 0 : i32
    return %arg0, %c0_i32, %c0_i32_0, %c0_i32_1 : i32, i32, i32, i32
  }
}

</mosaic_0001>

<bundles_post_ra>
// kernel: tpu_custom_call.1
= control target key start
LH: loop header
LB: loop body
LE: loop exit
PB: predicated region body
PF: predicated region fallthrough
CT: control target
= control target key end

     0   :  { %11 = vsyncpa [#allocation3], 0  ;;  %s2924_s0 = inlined_call_operand.vmem [shape: f32[2,4,8,2,8,2], index: 0, kind: input, shape index: {}]   ;;  %s2925_s1 = inlined_call_operand.vmem [shape: f32[3,3,4,1,1], index: 1, kind: input, shape index: {}]   ;;  %s2926_s2 = inlined_call_operand.vmem [shape: f32[4,1,1], index: 2, kind: input, shape index: {}]   ;;  %s2927_s3 = inlined_call_operand.vmem [shape: f32[4,8,1,1], index: 3, kind: input, shape index: {}]   ;;  %s2928_s4 = inlined_call_operand.vmem [shape: f32[8,1,1], index: 4, kind: input, shape index: {}]   ;;  %s2929_s5 = inlined_call_operand.vmem [shape: f32[8,1,1], index: 5, kind: input, shape index: {}]   ;;  %s2930_s6 = inlined_call_operand.hbm [shape: f32[2,8,8,8], index: 6, kind: output, shape index: {}]  }
   0x1   :  { %13 = vsyncpa [#allocation3 + $0x1], 0  ;;  %s2085_s21 = smov 0   ;;  %s2087_s22 = smov 0  }
   0x2   :  { %s2089_s23 = smov 0   ;;  %s2091_s24 = smov 0  }
   0x3 LB: > { %s2106_s25 = sadd.s32 4294967295, %s2043_s24   ;;  %s1776_s26 = sadd.s32 4294967294, %s2043_s24   ;;  %s2043_s24 = sphi %s2091_s24, %s2936_s24   ;;  %s2039_s23 = sphi %s2089_s23, %s2935_s23   ;;  %s2035_s22 = sphi %s2087_s22, %s2934_s22   ;;  %s2031_s21 = sphi %s2085_s21, %s2933_s21  }
   0x4   : > { %s2110_s27 = sadd.s32 1, %s2043_s24   ;;  %s157_s28 = sadd.s32 1, %s2039_s23 }
   0x5   : > { %s154_s29 = ssub.s32 %s2043_s24, %s2110_s27  ;;  %p167_p0 = scmp.ne.s32.totalorder %s2039_s23, %s2035_s22 }
   0x6   : > { %p155_p1 = scmp.eq.s32.totalorder %s154_s29, 0  ;;  %p168_p2 = scmp.eq.s32.totalorder %s2106_s25, 1 }
   0x7   : > { %p173_p3 = scmp.ne.s32.totalorder %s2035_s22, %s2031_s21  ;;  %p174_p4 = scmp.eq.s32.totalorder %s1776_s26, 1 }
   0x8   : > { %s2121_s30 = scalar_select %p155_p1, %s2039_s23, %s157_s28  }
   0x9   : > { %p2123_p5 = por %p168_p2, %p167_p0  ;;  %p2127_p6 = por %p174_p4, %p173_p3 }
   0xa   : > { %p1779_p7 = scmp.ge.s32.totalorder %s2043_s24, 1  ;;  %p215_p8 = scmp.lt.s32.totalorder %s2043_s24, 3 }
   0xc   : > { %p216_p9 = pnand %p1779_p7, %p215_p8 }
   0xd   : > { %p245_p10 = scmp.lt.s32.totalorder (!%p216_p9), %s2106_s25, 1  ;;  %s2046_s15 = smov (!%p216_p9), 127  }
   0xe   : > { %219 = sbr.rel (%p216_p9) target bundleno = 1231 (0x4cf), region = 44  ;;  %s1845_s28 = sshll.u32 (!%p216_p9), %s2106_s25, 6 }
   0xf   : > { %s1710_s11 = scalar_lea.hbm (!%p216_p9), %s2930_s6, %s1845_s28  ;;  %s2001_s18 = scalar_lea.hbm (!%p216_p9), %s2930_s6, 128 }
  0x13   : > { %s246_s9 = scalar_select %p245_p10, %s2106_s25, 1  ;;  %vm314_vm0 = vcmask 15360   ;;  %vm606_vm1 = vcmask 1041409   ;;  %vm608_vm2 = vcmask 1042434   ;;  %vm610_vm3 = vcmask 1043459  }
  0x14   : > { %vm612_vm4 = vcmask 1044484   ;;  %vm614_vm5 = vcmask 1045509   ;;  %vm616_vm6 = vcmask 1046534   ;;  %vm618_vm7 = vcmask 1047559  }
  0x15   : > { %s1844_s10 = sshll.u32 %s246_s9, 9  ;;  %vm645_vm8 = vcmask 7168   ;;  %vm650_vm9 = vcmask 72704   ;;  %vm667_vm10 = vcmask 1040384   ;;  %s2047_s9 = smov 126   ;;  %vm859_vm11 = vcmask 1046528  }
  0x16   : > { %s2138_s13 = scalar_lea.vmem %s2924_s0, %s1844_s10  ;;  %vm1071_vm12 = vcmask 1045504   ;;  %vm1689_vm13 = vcmask 64512  }
  0x17   : > { %v254_v0 = vld [vmem:[%s2138_s13 + $0x20] sm:$0xff]  ;;  %v252_v1 = vld [vmem:[%s2138_s13 + $0x10] sm:$0xff]  ;;  %v255_v6 = vld [vmem:[%s2138_s13 + $0x28] sm:$0xff] }
  0x18   : > { %v250_v2 = vld [vmem:[%s2138_s13] sm:$0xff]  ;;  %v327_v3 = vsel %vm314_vm0, %v254_v0, -inf  ;;  %v321_v4 = vsel %vm314_vm0, %v252_v1, -inf  ;;  %v253_v7 = vld [vmem:[%s2138_s13 + $0x18] sm:$0xff]  ;;  %v251_v8 = vld [vmem:[%s2138_s13 + $0x8] sm:$0xff]  ;;  %v330_v9 = vsel %vm314_vm0, %v255_v6, -inf }
  0x19   : > { %v315_v5 = vsel %vm314_vm0, %v250_v2, -inf  ;;  %328 = vmax.xlane.f32.xlu2 %v327_v3  ;;  %322 = vmax.xlane.f32.xlu1 %v321_v4  ;;  %v324_v10 = vsel %vm314_vm0, %v253_v7, -inf  ;;  %v318_v11 = vsel %vm314_vm0, %v251_v8, -inf  ;;  %v258_v12 = vld [vmem:[%s2138_s13 + $0x40] sm:$0xff]  ;;  %v257_v13 = vld [vmem:[%s2138_s13 + $0x38] sm:$0xff]  ;;  %v256_v14 = vld [vmem:[%s2138_s13 + $0x30] sm:$0xff] }
  0x1a   : > { %316 = vmax.xlane.f32.xlu0 %v315_v5  ;;  %v339_v15 = vsel %vm314_vm0, %v258_v12, -inf  ;;  %v336_v16 = vsel %vm314_vm0, %v257_v13, -inf  ;;  %v333_v17 = vsel %vm314_vm0, %v256_v14, -inf  ;;  %v261_v18 = vld [vmem:[%s2138_s13 + $0x58] sm:$0xff]  ;;  %v260_v19 = vld [vmem:[%s2138_s13 + $0x50] sm:$0xff]  ;;  %v259_v20 = vld [vmem:[%s2138_s13 + $0x48] sm:$0xff] }
  0x1b   : > { %v348_v21 = vsel %vm314_vm0, %v261_v18, -inf  ;;  %v345_v22 = vsel %vm314_vm0, %v260_v19, -inf  ;;  %v342_v23 = vsel %vm314_vm0, %v259_v20, -inf  ;;  %v264_v24 = vld [vmem:[%s2138_s13 + $0x70] sm:$0xff]  ;;  %v263_v25 = vld [vmem:[%s2138_s13 + $0x68] sm:$0xff]  ;;  %v262_v26 = vld [vmem:[%s2138_s13 + $0x60] sm:$0xff] }
  0x1c   : > { %v357_v27 = vsel %vm314_vm0, %v264_v24, -inf  ;;  %v354_v28 = vsel %vm314_vm0, %v263_v25, -inf  ;;  %v351_v29 = vsel %vm314_vm0, %v262_v26, -inf  ;;  %v267_v30 = vld [vmem:[%s2138_s13 + $0x88] sm:$0xff]  ;;  %v266_v31 = vld [vmem:[%s2138_s13 + $0x80] sm:$0xff]  ;;  %v265_v32 = vld [vmem:[%s2138_s13 + $0x78] sm:$0xff] }
  0x1d   : > { %v366_v33 = vsel %vm314_vm0, %v267_v30, -inf  ;;  %v363_v34 = vsel %vm314_vm0, %v266_v31, -inf  ;;  %v360_v35 = vsel %vm314_vm0, %v265_v32, -inf  ;;  %v270_v36 = vld [vmem:[%s2138_s13 + $0xa0] sm:$0xff]  ;;  %v269_v37 = vld [vmem:[%s2138_s13 + $0x98] sm:$0xff]  ;;  %v268_v38 = vld [vmem:[%s2138_s13 + $0x90] sm:$0xff] }
  0x1e   : > { %v375_v39 = vsel %vm314_vm0, %v270_v36, -inf  ;;  %v372_v40 = vsel %vm314_vm0, %v269_v37, -inf  ;;  %v369_v41 = vsel %vm314_vm0, %v268_v38, -inf  ;;  %v273_v42 = vld [vmem:[%s2138_s13 + $0xb8] sm:$0xff]  ;;  %v272_v43 = vld [vmem:[%s2138_s13 + $0xb0] sm:$0xff]  ;;  %v271_v44 = vld [vmem:[%s2138_s13 + $0xa8] sm:$0xff] }
  0x1f   : > { %v384_v45 = vsel %vm314_vm0, %v273_v42, -inf  ;;  %v381_v46 = vsel %vm314_vm0, %v272_v43, -inf  ;;  %v378_v47 = vsel %vm314_vm0, %v271_v44, -inf  ;;  %v276_v48 = vld [vmem:[%s2138_s13 + $0xd0] sm:$0xff]  ;;  %v275_v49 = vld [vmem:[%s2138_s13 + $0xc8] sm:$0xff]  ;;  %v274_v50 = vld [vmem:[%s2138_s13 + $0xc0] sm:$0xff] }
  0x20   : > { %v393_v51 = vsel %vm314_vm0, %v276_v48, -inf  ;;  %v390_v52 = vsel %vm314_vm0, %v275_v49, -inf  ;;  %v387_v53 = vsel %vm314_vm0, %v274_v50, -inf  ;;  %v279_v54 = vld [vmem:[%s2138_s13 + $0xe8] sm:$0xff]  ;;  %v278_v55 = vld [vmem:[%s2138_s13 + $0xe0] sm:$0xff]  ;;  %v277_v56 = vld [vmem:[%s2138_s13 + $0xd8] sm:$0xff] }
  0x21   : > { %331 = vmax.xlane.f32.xlu2 %v330_v9  ;;  %325 = vmax.xlane.f32.xlu1 %v324_v10  ;;  %v402_v57 = vsel %vm314_vm0, %v279_v54, -inf  ;;  %v399_v58 = vsel %vm314_vm0, %v278_v55, -inf  ;;  %v396_v59 = vsel %vm314_vm0, %v277_v56, -inf  ;;  %v282_v60 = vld [vmem:[%s2138_s13 + $0x100] sm:$0xff]  ;;  %v281_v61 = vld [vmem:[%s2138_s13 + $0xf8] sm:$0xff]  ;;  %v280_v62 = vld [vmem:[%s2138_s13 + $0xf0] sm:$0xff] }
  0x22   : > { %319 = vmax.xlane.f32.xlu0 %v318_v11  ;;  %v411_v63 = vsel %vm314_vm0, %v282_v60, -inf  ;;  %v408_v0 = vsel %vm314_vm0, %v281_v61, -inf  ;;  %v405_v1 = vsel %vm314_vm0, %v280_v62, -inf  ;;  %v285_v2 = vld [vmem:[%s2138_s13 + $0x118] sm:$0xff]  ;;  %v284_v3 = vld [vmem:[%s2138_s13 + $0x110] sm:$0xff]  ;;  %v283_v4 = vld [vmem:[%s2138_s13 + $0x108] sm:$0xff] }
  0x23   : > { %v420_v5 = vsel %vm314_vm0, %v285_v2, -inf  ;;  %v417_v6 = vsel %vm314_vm0, %v284_v3, -inf  ;;  %v414_v7 = vsel %vm314_vm0, %v283_v4, -inf  ;;  %v288_v8 = vld [vmem:[%s2138_s13 + $0x130] sm:$0xff]  ;;  %v287_v9 = vld [vmem:[%s2138_s13 + $0x128] sm:$0xff]  ;;  %v286_v10 = vld [vmem:[%s2138_s13 + $0x120] sm:$0xff] }
  0x24   : > { %v429_v11 = vsel %vm314_vm0, %v288_v8, -inf  ;;  %v426_v12 = vsel %vm314_vm0, %v287_v9, -inf  ;;  %v423_v13 = vsel %vm314_vm0, %v286_v10, -inf  ;;  %v291_v14 = vld [vmem:[%s2138_s13 + $0x148] sm:$0xff]  ;;  %v294_v20 = vld [vmem:[%s2138_s13 + $0x160] sm:$0xff]  ;;  %v297_v26 = vld [vmem:[%s2138_s13 + $0x178] sm:$0xff] }
  0x25   : > { %v295_v30 = vld [vmem:[%s2138_s13 + $0x168] sm:$0xff]  ;;  %v456_v32 = vsel %vm314_vm0, %v297_v26, -inf  ;;  %v301_v48 = vld [vmem:[%s2138_s13 + $0x198] sm:$0xff]  ;;  %v312_v8 = vld [vmem:[%s2138_s13 + $0x1f0] sm:$0xff] }
  0x26   : > { %v299_v36 = vld [vmem:[%s2138_s13 + $0x188] sm:$0xff]  ;;  %v305_v54 = vld [vmem:[%s2138_s13 + $0x1b8] sm:$0xff] }
  0x27   : > { %v462_v42 = vsel %vm314_vm0, %v299_v36, -inf  ;;  %v303_v44 = vld [vmem:[%s2138_s13 + $0x1a8] sm:$0xff]  ;;  %v480_v60 = vsel %vm314_vm0, %v305_v54, -inf  ;;  %v309_v62 = vld [vmem:[%s2138_s13 + $0x1d8] sm:$0xff] }
  0x28   : > { %v474_v50 = vsel %vm314_vm0, %v303_v44, -inf  ;;  %v307_v2 = vld [vmem:[%s2138_s13 + $0x1c8] sm:$0xff]  ;;  %v492_v4 = vsel %vm314_vm0, %v309_v62, -inf }
  0x29   : > { %340 = vmax.xlane.f32.xlu2 %v339_v15  ;;  %337 = vmax.xlane.f32.xlu1 %v336_v16  ;;  %v290_v15 = vld [vmem:[%s2138_s13 + $0x140] sm:$0xff]  ;;  %v289_v16 = vld [vmem:[%s2138_s13 + $0x138] sm:$0xff]  ;;  %v311_v9 = vld [vmem:[%s2138_s13 + $0x1e8] sm:$0xff] }
  0x2a   : > { %334 = vmax.xlane.f32.xlu0 %v333_v17  ;;  %v438_v17 = vsel %vm314_vm0, %v291_v14, -inf  ;;  %v435_v18 = vsel %vm314_vm0, %v290_v15, -inf  ;;  %v432_v19 = vsel %vm314_vm0, %v289_v16, -inf  ;;  %v501_v14 = vsel %vm314_vm0, %v312_v8, -inf }
  0x2b   : > { %v498_v15 = vsel %vm314_vm0, %v311_v9, -inf }
  0x31   : > { %349 = vmax.xlane.f32.xlu2 %v348_v21  ;;  %346 = vmax.xlane.f32.xlu1 %v345_v22  ;;  %v293_v21 = vld [vmem:[%s2138_s13 + $0x158] sm:$0xff]  ;;  %v292_v22 = vld [vmem:[%s2138_s13 + $0x150] sm:$0xff] }
  0x32   : > { %343 = vmax.xlane.f32.xlu0 %v342_v23  ;;  %v447_v23 = vsel %vm314_vm0, %v294_v20, -inf  ;;  %v444_v24 = vsel %vm314_vm0, %v293_v21, -inf  ;;  %v441_v25 = vsel %vm314_vm0, %v292_v22, -inf }
  0x39   : > { %358 = vmax.xlane.f32.xlu2 %v357_v27  ;;  %355 = vmax.xlane.f32.xlu1 %v354_v28  ;;  %v296_v27 = vld [vmem:[%s2138_s13 + $0x170] sm:$0xff] }
  0x3a   : > { %352 = vmax.xlane.f32.xlu0 %v351_v29 }
  0x41   : > { %367 = vmax.xlane.f32.xlu2 %v366_v33  ;;  %364 = vmax.xlane.f32.xlu1 %v363_v34  ;;  %v453_v33 = vsel %vm314_vm0, %v296_v27, -inf  ;;  %v450_v34 = vsel %vm314_vm0, %v295_v30, -inf }
  0x42   : > { %361 = vmax.xlane.f32.xlu0 %v360_v35  ;;  %v300_v35 = vld [vmem:[%s2138_s13 + $0x190] sm:$0xff] }
  0x49   : > { %376 = vmax.xlane.f32.xlu2 %v375_v39  ;;  %373 = vmax.xlane.f32.xlu1 %v372_v40  ;;  %v298_v39 = vld [vmem:[%s2138_s13 + $0x180] sm:$0xff] }
  0x4a   : > { %370 = vmax.xlane.f32.xlu0 %v369_v41  ;;  %v465_v41 = vsel %vm314_vm0, %v300_v35, -inf  ;;  %v459_v43 = vsel %vm314_vm0, %v298_v39, -inf }
  0x51   : > { %385 = vmax.xlane.f32.xlu2 %v384_v45  ;;  %382 = vmax.xlane.f32.xlu1 %v381_v46  ;;  %v302_v45 = vld [vmem:[%s2138_s13 + $0x1a0] sm:$0xff] }
  0x52   : > { %379 = vmax.xlane.f32.xlu0 %v378_v47 }
  0x59   : > { %394 = vmax.xlane.f32.xlu2 %v393_v51  ;;  %391 = vmax.xlane.f32.xlu1 %v390_v52  ;;  %v471_v51 = vsel %vm314_vm0, %v302_v45, -inf  ;;  %v468_v52 = vsel %vm314_vm0, %v301_v48, -inf }
  0x5a   : > { %388 = vmax.xlane.f32.xlu0 %v387_v53  ;;  %v306_v53 = vld [vmem:[%s2138_s13 + $0x1c0] sm:$0xff] }
  0x61   : > { %403 = vmax.xlane.f32.xlu2 %v402_v57  ;;  %400 = vmax.xlane.f32.xlu1 %v399_v58  ;;  %v304_v57 = vld [vmem:[%s2138_s13 + $0x1b0] sm:$0xff] }
  0x62   : > { %397 = vmax.xlane.f32.xlu0 %v396_v59  ;;  %v483_v59 = vsel %vm314_vm0, %v306_v53, -inf  ;;  %v477_v61 = vsel %vm314_vm0, %v304_v57, -inf  ;;  %v1896_v53 = vld [vmem:[%s2925_s1 + $0x3] ss:$0 sm:$0xff] }
  0x69   : > { %412 = vmax.xlane.f32.xlu2 %v411_v63  ;;  %409 = vmax.xlane.f32.xlu1 %v408_v0  ;;  %v308_v63 = vld [vmem:[%s2138_s13 + $0x1d0] sm:$0xff] }
  0x6a   : > { %406 = vmax.xlane.f32.xlu0 %v405_v1 }
  0x71   : > { %421 = vmax.xlane.f32.xlu2 %v420_v5  ;;  %418 = vmax.xlane.f32.xlu1 %v417_v6  ;;  %v489_v5 = vsel %vm314_vm0, %v308_v63, -inf  ;;  %v486_v6 = vsel %vm314_vm0, %v307_v2, -inf }
  0x72   : > { %415 = vmax.xlane.f32.xlu0 %v414_v7  ;;  %v2045_v7 = vmov 0  }
  0x73   : > { %1891 = vset.pattern.permute.xlu2 %v2045_v7  ;;  %1890 = vset.pattern.permute.xlu1 %v2045_v7 }
  0x74   : > { %1892 = vset.pattern.permute.xlu0 %v2045_v7 }
  0x79   : > { %430 = vmax.xlane.f32.xlu2 %v429_v11  ;;  %427 = vmax.xlane.f32.xlu1 %v426_v12  ;;  %v310_v12 = vld [vmem:[%s2138_s13 + $0x1e0] sm:$0xff] }
  0x7a   : > { %424 = vmax.xlane.f32.xlu0 %v423_v13  ;;  %v495_v16 = vsel %vm314_vm0, %v310_v12, -inf }
  0x81   : > { %439 = vmax.xlane.f32.xlu2 %v438_v17  ;;  %436 = vmax.xlane.f32.xlu1 %v435_v18 }
  0x82   : > { %433 = vmax.xlane.f32.xlu0 %v432_v19  ;;  %v313_v19 = vld [vmem:[%s2138_s13 + $0x1f8] sm:$0xff] }
  0x83   : > { %v504_v21 = vsel %vm314_vm0, %v313_v19, -inf }
  0x89   : > { %448 = vmax.xlane.f32.xlu2 %v447_v23  ;;  %445 = vmax.xlane.f32.xlu1 %v444_v24 }
  0x8a   : > { %442 = vmax.xlane.f32.xlu0 %v441_v25  ;;  %v571_v25 = vlaneseq }
  0x8c   : > { %v2232_v28 = vpop.xlane.xlu2 %328  ;;  %v2234_v29 = vpop.xlane.xlu1 %322 }
  0x8d   : > { %v2237_v31 = vpop.xlane.xlu0 %316 }
  0x91   : > { %457 = vmax.xlane.f32.xlu2 %v456_v32  ;;  %454 = vmax.xlane.f32.xlu1 %v453_v33  ;;  %v1893_v32 = vld [vmem:[%s2925_s1 + $0x1] ss:$0 sm:$0xff]  ;;  %v572_v33 = vand.u32 127, %v571_v25 }
  0x92   : > { %451 = vmax.xlane.f32.xlu0 %v450_v34  ;;  %v1894_v34 = vld [vmem:[%s2925_s1] ss:$0 sm:$0xff] }
  0x93   : > { %v2306_v39 = vadd.s32 4294967295, %v572_v33 }
  0x94   : > { %v2244_v37 = vpop.xlane.xlu2 %331  ;;  %v2246_v38 = vpop.xlane.xlu1 %325 }
  0x95   : > { %v2249_v40 = vpop.xlane.xlu0 %319 }
  0x99   : > { %466 = vmax.xlane.f32.xlu2 %v465_v41  ;;  %463 = vmax.xlane.f32.xlu1 %v462_v42  ;;  %v1895_v42 = vld [vmem:[%s2925_s1 + $0x2] ss:$0 sm:$0xff] }
  0x9a   : > { %460 = vmax.xlane.f32.xlu0 %v459_v43 }
  0x9c   : > { %v2256_v46 = vpop.xlane.xlu2 %340  ;;  %v2258_v47 = vpop.xlane.xlu1 %337 }
  0x9d   : > { %v2261_v49 = vpop.xlane.xlu0 %334 }
  0xa1   : > { %475 = vmax.xlane.f32.xlu2 %v474_v50  ;;  %472 = vmax.xlane.f32.xlu1 %v471_v51 }
  0xa2   : > { %469 = vmax.xlane.f32.xlu0 %v468_v52 }
  0xa4   : > { %v2268_v55 = vpop.xlane.xlu2 %349  ;;  %v2270_v56 = vpop.xlane.xlu1 %346 }
  0xa5   : > { %v2273_v58 = vpop.xlane.xlu0 %343 }
  0xa9   : > { %484 = vmax.xlane.f32.xlu2 %v483_v59  ;;  %481 = vmax.xlane.f32.xlu1 %v480_v60  ;;  %v1897_v59 = vld [vmem:[%s2925_s1 + $0x4] ss:$0 sm:$0xff] }
  0xaa   : > { %478 = vmax.xlane.f32.xlu0 %v477_v61 }
  0xac   : > { %v2280_v0 = vpop.xlane.xlu2 %358  ;;  %v2282_v1 = vpop.xlane.xlu1 %355 }
  0xad   : > { %v2285_v3 = vpop.xlane.xlu0 %352 }
  0xb1   : > { %493 = vmax.xlane.f32.xlu2 %v492_v4  ;;  %490 = vmax.xlane.f32.xlu1 %v489_v5 }
  0xb2   : > { %487 = vmax.xlane.f32.xlu0 %v486_v6 }
  0xb4   : > { %v368_v10 = vpop.xlane.xlu2 %367  ;;  %v365_v11 = vpop.xlane.xlu1 %364 }
  0xb5   : > { %v2293_v13 = vpop.xlane.xlu0 %361  ;;  %v515_v41 = vmax.f32 %v365_v11, %v368_v10  ;;  %v1898_v11 = vld [vmem:[%s2925_s1 + $0x5] ss:$0 sm:$0xff] }
  0xb7   : > { %v582_v54 = vperm.slane %v515_v41, %v2306_v39 }
  0xb9   : > { %502 = vmax.xlane.f32.xlu2 %v501_v14  ;;  %499 = vmax.xlane.f32.xlu1 %v498_v15  ;;  %v1899_v15 = vld [vmem:[%s2925_s1 + $0x6] ss:$0 sm:$0xff] }
  0xba   : > { %496 = vmax.xlane.f32.xlu0 %v495_v16 }
  0xbc   : > { %v377_v17 = vpop.xlane.xlu2 %376  ;;  %v374_v18 = vpop.xlane.xlu1 %373 }
  0xbd   : > { %v371_v20 = vpop.xlane.xlu0 %370 }
  0xbe   : > { %v516_v35 = vmax.f32 %v371_v20, %v374_v18 }
  0xc0   : > { %v583_v43 = vperm.slane %v516_v35, %v2306_v39 }
  0xc2   : > { %505 = vmax.xlane.f32.xlu0 %v504_v21  ;;  %v620_v60 = vsel %vm606_vm1, %v583_v43, %v582_v54 }
  0xc4   : > { %v386_v22 = vpop.xlane.xlu2 %385  ;;  %v383_v23 = vpop.xlane.xlu1 %382 }
  0xc5   : > { %v380_v24 = vpop.xlane.xlu0 %379  ;;  %v518_v44 = vmax.f32 %v383_v23, %v386_v22  ;;  %v1900_v23 = vld [vmem:[%s2925_s1 + $0x7] ss:$0 sm:$0xff] }
  0xc6   : > { %v517_v36 = vmax.f32 %v377_v17, %v380_v24 }
  0xc7   : > { %v585_v61 = vperm.slane %v518_v44, %v2306_v39 }
  0xc8   : > { %v584_v50 = vperm.slane %v517_v36, %v2306_v39 }
  0xca   : > { %v621_v62 = vsel %vm608_vm2, %v584_v50, %v620_v60 }
  0xcb   : > { %v622_v5 = vsel %vm610_vm3, %v585_v61, %v621_v62 }
  0xcc   : > { %v395_v26 = vpop.xlane.xlu2 %394  ;;  %v392_v27 = vpop.xlane.xlu1 %391 }
  0xcd   : > { %v389_v30 = vpop.xlane.xlu0 %388 }
  0xce   : > { %v519_v51 = vmax.f32 %v389_v30, %v392_v27 }
  0xd0   : > { %v586_v63 = vperm.slane %v519_v51, %v2306_v39 }
  0xd1   : > { %693 = vperm.xlu2 %1891, %v1893_v32  }
  0xd2   : > { %689 = vperm.xlu1 %1890, %v1894_v34   ;;  %v623_v8 = vsel %vm612_vm4, %v586_v63, %v622_v5 }
  0xd4   : > { %v404_v45 = vpop.xlane.xlu2 %403  ;;  %v401_v48 = vpop.xlane.xlu1 %400 }
  0xd5   : > { %v398_v52 = vpop.xlane.xlu0 %397  ;;  %v521_v2 = vmax.f32 %v401_v48, %v404_v45 }
  0xd6   : > { %v520_v57 = vmax.f32 %v395_v26, %v398_v52  ;;  %697 = vperm.xlu0 %1892, %v1895_v42  }
  0xd7   : > { %v588_v9 = vperm.slane %v521_v2, %v2306_v39 }
  0xd8   : > { %v587_v4 = vperm.slane %v520_v57, %v2306_v39 }
  0xd9   : > { %701 = vperm.xlu2 %1891, %v1896_v53  }
  0xda   : > { %722 = vperm.xlu1 %1890, %v1897_v59   ;;  %v624_v12 = vsel %vm614_vm5, %v587_v4, %v623_v8 }
  0xdb   : > { %v625_v17 = vsel %vm616_vm6, %v588_v9, %v624_v12 }
  0xdc   : > { %v413_v6 = vpop.xlane.xlu2 %412  ;;  %v410_v7 = vpop.xlane.xlu1 %409 }
  0xdd   : > { %v407_v10 = vpop.xlane.xlu0 %406 }
  0xde   : > { %v522_v14 = vmax.f32 %v407_v10, %v410_v7 }
  0xe0   : > { %v589_v16 = vperm.slane %v522_v14, %v2306_v39 }
  0xe1   : > { %726 = vperm.xlu2 %1891, %v1898_v11  }
  0xe2   : > { %v2338_v18 = vsel %vm618_vm7, %v589_v16, %v625_v17  ;;  %730 = vperm.xlu1 %1890, %v1899_v15  }
  0xe4   : > { %v422_v19 = vpop.xlane.xlu2 %421  ;;  %v419_v20 = vpop.xlane.xlu1 %418 }
  0xe5   : > { %v524_v21 = vmax.f32 %v419_v20, %v422_v19  ;;  %v416_v22 = vpop.xlane.xlu0 %415 }
  0xe6   : > { %v523_v24 = vmax.f32 %v413_v6, %v416_v22 }
  0xe7   : > { %v591_v25 = vperm.slane %v524_v21, %v2306_v39 }
  0xe8   : > { %v590_v26 = vperm.slane %v523_v24, %v2306_v39  ;;  %v507_v24 = vmax.f32 %v2237_v31, %v2249_v40 }
  0xe9   : > { %734 = vperm.xlu2 %1891, %v1900_v23   ;;  %v508_v23 = vmax.f32 %v2234_v29, %v2246_v38 }
  0xea   : > { %v627_v27 = vsel %vm606_vm1, %v591_v25, %v590_v26  ;;  %v509_v26 = vmax.f32 %v2232_v28, %v2244_v37  ;;  %v512_v28 = vmax.f32 %v2270_v56, %v2268_v55 }
  0xec   : > { %v431_v30 = vpop.xlane.xlu2 %430  ;;  %v428_v32 = vpop.xlane.xlu1 %427  ;;  %v576_v29 = vperm.slane %v509_v26, %v2306_v39 }
  0xed   : > { %v425_v33 = vpop.xlane.xlu0 %424 }
  0xee   : > { %v525_v34 = vmax.f32 %v425_v33, %v428_v32  ;;  %v510_v32 = vmax.f32 %v2261_v49, %v2258_v47  ;;  %v511_v33 = vmax.f32 %v2256_v46, %v2273_v58  ;;  %v513_v47 = vmax.f32 %v2285_v3, %v2282_v1 }
  0xef   : > { %v514_v58 = vmax.f32 %v2280_v0, %v2293_v13  ;;  %v647_v1 = vsel %vm645_vm8, 0.0, %v2338_v18 }
  0xf0   : > { %v592_v35 = vperm.slane %v525_v34, %v2306_v39  ;;  %v577_v40 = vperm.slane %v510_v32, %v2306_v39  ;;  %v578_v37 = vperm.slane %v511_v33, %v2306_v39  ;;  %v580_v56 = vperm.slane %v513_v47, %v2306_v39 }
  0xf2   : > { %v628_v36 = vsel %vm608_vm2, %v592_v35, %v627_v27  ;;  %v575_v27 = vperm.slane %v508_v23, %v2306_v39 }
  0xf4   : > { %v440_v41 = vpop.xlane.xlu2 %439  ;;  %v437_v42 = vpop.xlane.xlu1 %436 }
  0xf5   : > { %v527_v43 = vmax.f32 %v437_v42, %v440_v41  ;;  %v434_v44 = vpop.xlane.xlu0 %433  ;;  %v579_v42 = vperm.slane %v512_v28, %v2306_v39 }
  0xf6   : > { %v526_v45 = vmax.f32 %v431_v30, %v434_v44  ;;  %v574_v30 = vperm.slane %v507_v24, %v2306_v39 }
  0xf7   : > { %v594_v48 = vperm.slane %v527_v43, %v2306_v39 }
  0xf8   : > { %v593_v50 = vperm.slane %v526_v45, %v2306_v39  ;;  %v607_v31 = vsel %vm606_vm1, %v575_v27, %v574_v30  ;;  %v581_v45 = vperm.slane %v514_v58, %v2306_v39 }
  0xf9   : > { %v609_v46 = vsel %vm608_vm2, %v576_v29, %v607_v31 }
  0xfa   : > { %v629_v51 = vsel %vm610_vm3, %v593_v50, %v628_v36  ;;  %v611_v36 = vsel %vm610_vm3, %v577_v40, %v609_v46  ;;  %v1904_v46 = vld [vmem:[%s2925_s1 + $0xa] ss:$0 sm:$0xff] }
  0xfb   : > { %v630_v52 = vsel %vm612_vm4, %v594_v48, %v629_v51  ;;  %v613_v43 = vsel %vm612_vm4, %v578_v37, %v611_v36 }
  0xfc   : > { %v449_v53 = vpop.xlane.xlu2 %448  ;;  %v446_v54 = vpop.xlane.xlu1 %445  ;;  %v615_v51 = vsel %vm614_vm5, %v579_v42, %v613_v43 }
  0xfd   : > { %v443_v57 = vpop.xlane.xlu0 %442 }
  0xfe   : > { %v528_v59 = vmax.f32 %v443_v57, %v446_v54  ;;  %v617_v54 = vsel %vm616_vm6, %v580_v56, %v615_v51 }
 0x100   : > { %v595_v62 = vperm.slane %v528_v59, %v2306_v39 }
 0x102   : > { %v631_v7 = vsel %vm614_vm5, %v595_v62, %v630_v52  ;;  %v2398_v52 = vsel %vm650_vm9, %v647_v1, 0.0 }
 0x104   : > { %v458_v60 = vpop.xlane.xlu2 %457  ;;  %v455_v61 = vpop.xlane.xlu1 %454 }
 0x105   : > { %v530_v63 = vmax.f32 %v455_v61, %v458_v60  ;;  %v452_v2 = vpop.xlane.xlu0 %451  ;;  %v619_v61 = vsel %vm618_vm7, %v581_v45, %v617_v54 }
 0x106   : > { %v529_v4 = vmax.f32 %v449_v53, %v452_v2  ;;  %v660_v2 = vrot.slane %v2398_v52, 7 }
 0x107   : > { %v597_v5 = vperm.slane %v530_v63, %v2306_v39 }
 0x108   : > { %v596_v6 = vperm.slane %v529_v4, %v2306_v39 }
 0x10a   : > { %v632_v8 = vsel %vm616_vm6, %v596_v6, %v631_v7  ;;  %v646_v6 = vsel %vm645_vm8, 0.0, %v619_v61 }
 0x10b   : > { %v2358_v9 = vsel %vm618_vm7, %v597_v5, %v632_v8 }
 0x10c   : > { %v467_v10 = vpop.xlane.xlu2 %466  ;;  %v464_v12 = vpop.xlane.xlu1 %463 }
 0x10d   : > { %v461_v11 = vpop.xlane.xlu0 %460 }
 0x10e   : > { %v531_v41 = vmax.f32 %v461_v11, %v464_v12  ;;  %v2416_v12 = vsel %vm667_vm10, 0.0, %v660_v2 }
 0x110   : > { %v598_v13 = vperm.slane %v531_v41, %v2306_v39 }
 0x114   : > { %v476_v14 = vpop.xlane.xlu2 %475  ;;  %v473_v17 = vpop.xlane.xlu1 %472 }
 0x115   : > { %v470_v15 = vpop.xlane.xlu0 %469  ;;  %v533_v55 = vmax.f32 %v473_v17, %v476_v14  ;;  %v2420_v17 = vsel %vm650_vm9, %v646_v6, 0.0 }
 0x116   : > { %v532_v49 = vmax.f32 %v467_v10, %v470_v15 }
 0x117   : > { %v600_v53 = vperm.slane %v533_v55, %v2306_v39 }
 0x118   : > { %v599_v3 = vperm.slane %v532_v49, %v2306_v39  ;;  %v1903_v49 = vld [vmem:[%s2925_s1 + $0x9] ss:$0 sm:$0xff] }
 0x11a   : > { %v634_v57 = vsel %vm606_vm1, %v599_v3, %v598_v13  ;;  %v1905_v3 = vld [vmem:[%s2925_s1 + $0xc] ss:$0 sm:$0xff] }
 0x11b   : > { %v635_v5 = vsel %vm608_vm2, %v600_v53, %v634_v57  ;;  %v1907_v57 = vld [vmem:[%s2925_s1 + $0x12] ss:$0 sm:$0xff] }
 0x11c   : > { %v485_v16 = vpop.xlane.xlu2 %484  ;;  %v482_v21 = vpop.xlane.xlu1 %481 }
 0x11d   : > { %v479_v19 = vpop.xlane.xlu0 %478 }
 0x11e   : > { %v534_v44 = vmax.f32 %v479_v19, %v482_v21 }
 0x120   : > { %v601_v59 = vperm.slane %v534_v44, %v2306_v39 }
 0x122   : > { %v636_v7 = vsel %vm610_vm3, %v601_v59, %v635_v5  ;;  %v1908_v59 = vld [vmem:[%s2925_s1 + $0xe] ss:$0 sm:$0xff] }
 0x124   : > { %v494_v20 = vpop.xlane.xlu2 %493  ;;  %v491_v34 = vpop.xlane.xlu1 %490 }
 0x125   : > { %v488_v22 = vpop.xlane.xlu0 %487  ;;  %v536_v60 = vmax.f32 %v491_v34, %v494_v20 }
 0x126   : > { %v535_v0 = vmax.f32 %v485_v16, %v488_v22  ;;  %v659_v22 = vrot.slane %v2420_v17, 7 }
 0x127   : > { %v603_v8 = vperm.slane %v536_v60, %v2306_v39 }
 0x128   : > { %v602_v62 = vperm.slane %v535_v0, %v2306_v39  ;;  %v2437_v26 = vsel %vm667_vm10, 0.0, %v659_v22 }
 0x12a   : > { %v637_v10 = vsel %vm612_vm4, %v602_v62, %v636_v7  ;;  %v1909_v62 = vld [vmem:[%s2925_s1 + $0xd] ss:$0 sm:$0xff] }
 0x12b   : > { %v638_v20 = vsel %vm614_vm5, %v603_v8, %v637_v10 }
 0x12c   : > { %v503_v25 = vpop.xlane.xlu2 %502  ;;  %v500_v48 = vpop.xlane.xlu1 %499 }
 0x12d   : > { %v497_v38 = vpop.xlane.xlu0 %496 }
 0x12e   : > { %v537_v63 = vmax.f32 %v497_v38, %v500_v48  ;;  %v1902_v38 = vld [vmem:[%s2925_s1 + $0xb] ss:$0 sm:$0xff] }
 0x130   : > { %v604_v11 = vperm.slane %v537_v63, %v2306_v39  ;;  %v1911_v63 = vld [vmem:[%s2925_s1 + $0x10] ss:$0 sm:$0xff] }
 0x132   : > { %v639_v21 = vsel %vm616_vm6, %v604_v11, %v638_v20 }
 0x134   : > { %v2375_v35 = vpop.permute.xlu2 %693 }
 0x135   : > { %v506_v18 = vpop.xlane.xlu0 %505  ;;  %v705_v41 = vmul.f32 %v2375_v35, %v2416_v12  ;;  %v1906_v35 = vld [vmem:[%s2925_s1 + $0xf] ss:$0 sm:$0xff] }
 0x136   : > { %v538_v4 = vmax.f32 %v503_v25, %v506_v18  ;;  %v1901_v25 = vld [vmem:[%s2925_s1 + $0x8] ss:$0 sm:$0xff] }
 0x138   : > { %v605_v14 = vperm.slane %v538_v4, %v2306_v39  ;;  %v648_v39 = vsel %vm645_vm8, 0.0, %v2358_v9  ;;  %v1912_v4 = vld [vmem:[%s2925_s1 + $0x13] ss:$0 sm:$0xff] }
 0x139   : > { %v2440_v30 = vsel %vm650_vm9, %v648_v39, 0.0 }
 0x13a   : > { %v640_v23 = vsel %vm618_vm7, %v605_v14, %v639_v21  ;;  %v661_v9 = vrot.slane %v2440_v30, 7 }
 0x13b   : > { %v649_v24 = vsel %vm645_vm8, 0.0, %v640_v23 }
 0x13c   : > { %v2394_v50 = vpop.permute.xlu2 %701  ;;  %v2444_v33 = vsel %vm650_vm9, %v649_v24, 0.0  ;;  %v2455_v31 = vsel %vm667_vm10, 0.0, %v661_v9 }
 0x13d   : > { %v662_v34 = vrot.slane %v2444_v33, 7 }
 0x13f   : > { %v2460_v28 = vsel %vm667_vm10, 0.0, %v662_v34 }
 0x140   : > { %v707_v48 = vmul.f32 %v2394_v50, %v2460_v28  ;;  %v1910_v50 = vld [vmem:[%s2925_s1 + $0x11] ss:$0 sm:$0xff] }
 0x144   : > { %v727_v15 = vpop.permute.xlu2 %726  ;;  %v690_v16 = vpop.permute.xlu1 %689 }
 0x145   : > { %v738_v19 = vmul.f32 %v727_v15, %v2416_v12  ;;  %v704_v1 = vmul.f32 %v690_v16, %v2437_v26  ;;  %v2516_v15 = vsel %vm667_vm10, %v659_v22, 0.0 }
 0x147   : > { %747 = vrot.lane.b32.xlu0 %v738_v19, %s2046_s15  ;;  %v2521_v19 = vsel %vm667_vm10, %v660_v2, 0.0 }
 0x148   : > { %v2472_v58 = vpop.permute.xlu0 %697 }
 0x14c   : > { %v723_v27 = vpop.permute.xlu1 %722  ;;  %v735_v29 = vpop.permute.xlu2 %734 }
 0x14d   : > { %v737_v32 = vmul.f32 %v723_v27, %v2437_v26  ;;  %v740_v47 = vmul.f32 %v735_v29, %v2460_v28  ;;  %v2533_v29 = vsel %vm667_vm10, %v662_v34, 0.0 }
 0x14f   : > { %745 = vrot.lane.b32.xlu1 %v737_v32, %s2046_s15  ;;  %775 = vperm.xlu0 %1892, %v1901_v25  }
 0x154   : > { %v731_v40 = vpop.permute.xlu1 %730 }
 0x155   : > { %v739_v37 = vmul.f32 %v731_v40, %v2455_v31 }
 0x157   : > { %787 = vperm.xlu0 %1892, %v1902_v38   ;;  %749 = vrot.lane.b32.xlu2 %v739_v37, %s2046_s15 }
 0x158   : > { %751 = vrot.lane.b32.xlu1 %v740_v47, %s2046_s15  ;;  %v2540_v47 = vsel %vm667_vm10, %v661_v9, 0.0 }
 0x15f   : > { %779 = vperm.xlu2 %1891, %v1903_v49   ;;  %v1913_v49 = vld [vmem:[%s2925_s1 + $0x14] ss:$0 sm:$0xff] }
 0x160   : > { %783 = vperm.xlu1 %1890, %v1904_v46  }
 0x1b1   : > { %v2474_v36 = vpop.permute.xlu2 %749 }
 0x1b9   : > { %v780_v42 = vpop.permute.xlu2 %779  ;;  %v748_v43 = vpop.permute.xlu0 %747 }
 0x1ba   : > { %v791_v55 = vmul.f32 %v780_v42, %v2416_v12  ;;  %v758_v56 = vadd.f32 %v748_v43, %v705_v41  ;;  %v706_v43 = vmul.f32 %v2472_v58, %v2455_v31 }
 0x1bc   : > { %800 = vrot.lane.b32.xlu1 %v791_v55, %s2047_s9 }
 0x1c1   : > { %v746_v44 = vpop.permute.xlu1 %745  ;;  %v776_v45 = vpop.permute.xlu0 %775 }
 0x1c2   : > { %v757_v0 = vadd.f32 %v746_v44, %v704_v1  ;;  %v790_v13 = vmul.f32 %v776_v45, %v2437_v26 }
 0x1c4   : > { %828 = vperm.xlu1 %1890, %v1905_v3   ;;  %798 = vrot.lane.b32.xlu2 %v790_v13, %s2047_s9  ;;  %v1914_v13 = vld [vmem:[%s2925_s1 + $0x17] ss:$0 sm:$0xff] }
 0x1c9   : > { %v788_v51 = vpop.permute.xlu0 %787 }
 0x1ca   : > { %v752_v53 = vpop.permute.xlu1 %751  ;;  %v793_v18 = vmul.f32 %v788_v51, %v2460_v28 }
 0x1cb   : > { %v760_v54 = vadd.f32 %v752_v53, %v707_v48 }
 0x1cc   : > { %840 = vperm.xlu1 %1890, %v1906_v35   ;;  %804 = vrot.lane.b32.xlu2 %v793_v18, %s2047_s9 }
 0x1d2   : > { %v784_v60 = vpop.permute.xlu1 %783 }
 0x1d3   : > { %v792_v61 = vmul.f32 %v784_v60, %v2455_v31 }
 0x1d4   : > { %902 = vperm.xlu1 %1890, %v1907_v57   ;;  %836 = vperm.xlu2 %1891, %v1908_v59   ;;  %v1915_v57 = vld [vmem:[%s2925_s1 + $0x15] ss:$0 sm:$0xff] }
 0x1d5   : > { %802 = vrot.lane.b32.xlu0 %v792_v61, %s2047_s9 }
 0x1dc   : > { %898 = vperm.xlu2 %1891, %v1910_v50  }
 0x1dd   : > { %832 = vperm.xlu0 %1892, %v1909_v62  }
 0x1e5   : > { %894 = vperm.xlu0 %1892, %v1911_v63  }
 0x1ed   : > { %906 = vperm.xlu0 %1892, %v1912_v4  }
 0x21e   : > { %v799_v5 = vpop.permute.xlu2 %798 }
 0x21f   : > { %v810_v6 = vadd.f32 %v799_v5, %v757_v0 }
 0x226   : > { %v805_v7 = vpop.permute.xlu2 %804 }
 0x227   : > { %v813_v8 = vadd.f32 %v805_v7, %v760_v54 }
 0x22e   : > { %v801_v10 = vpop.permute.xlu1 %800  ;;  %v837_v11 = vpop.permute.xlu2 %836 }
 0x22f   : > { %v811_v14 = vadd.f32 %v801_v10, %v758_v56  ;;  %v847_v46 = vmul.f32 %v837_v11, %v2455_v31  ;;  %v848_v33 = vmul.f32 %v837_v11, %v2540_v47  ;;  %v759_v56 = vadd.f32 %v2474_v36, %v706_v43 }
 0x231   : > { %v866_v55 = vrot.slane %v847_v46, 1  ;;  %v867_v9 = vrot.slane %v848_v33, 1 }
 0x233   : > { %v868_v58 = vsel %vm859_vm11, %v866_v55, %v867_v9 }
 0x236   : > { %v829_v16 = vpop.permute.xlu1 %828  ;;  %v899_v20 = vpop.permute.xlu2 %898 }
 0x237   : > { %v843_v21 = vmul.f32 %v829_v16, %v2437_v26  ;;  %v844_v23 = vmul.f32 %v829_v16, %v2516_v15  ;;  %v911_v39 = vmul.f32 %v899_v20, %v2416_v12  ;;  %v912_v24 = vmul.f32 %v899_v20, %v2521_v19 }
 0x239   : > { %v860_v25 = vrot.slane %v843_v21, 1  ;;  %v861_v17 = vrot.slane %v844_v23, 1  ;;  %v928_v27 = vrot.slane %v911_v39, 1  ;;  %v929_v22 = vrot.slane %v912_v24, 1  ;;  %v1916_v21 = vld [vmem:[%s2925_s1 + $0x16] ss:$0 sm:$0xff] }
 0x23b   : > { %v930_v32 = vsel %vm859_vm11, %v928_v27, %v929_v22  ;;  %v862_v52 = vsel %vm859_vm11, %v860_v25, %v861_v17 }
 0x23c   : > { %939 = vrot.lane.b32.xlu1 %v930_v32, %s2046_s15  ;;  %v876_v2 = vadd.f32 %v862_v52, %v810_v6 }
 0x23e   : > { %v841_v38 = vpop.permute.xlu1 %840 }
 0x23f   : > { %v849_v40 = vmul.f32 %v841_v38, %v2460_v28  ;;  %v850_v37 = vmul.f32 %v841_v38, %v2533_v29 }
 0x241   : > { %v869_v34 = vrot.slane %v849_v40, 1  ;;  %v870_v41 = vrot.slane %v850_v37, 1 }
 0x243   : > { %v871_v42 = vsel %vm859_vm11, %v869_v34, %v870_v41 }
 0x244   : > { %967 = vperm.xlu1 %1890, %v1913_v49   ;;  %v879_v30 = vadd.f32 %v871_v42, %v813_v8 }
 0x246   : > { %v903_v1 = vpop.permute.xlu1 %902 }
 0x247   : > { %v913_v3 = vmul.f32 %v903_v1, %v2455_v31  ;;  %v914_v44 = vmul.f32 %v903_v1, %v2540_v47  ;;  %v803_v45 = vpop.permute.xlu0 %802 }
 0x248   : > { %v812_v0 = vadd.f32 %v803_v45, %v759_v56 }
 0x249   : > { %v931_v35 = vrot.slane %v913_v3, 1  ;;  %v932_v48 = vrot.slane %v914_v44, 1 }
 0x24a   : > { %v878_v51 = vadd.f32 %v868_v58, %v812_v0 }
 0x24b   : > { %v933_v53 = vsel %vm859_vm11, %v931_v35, %v932_v48 }
 0x24c   : > { %941 = vrot.lane.b32.xlu0 %v933_v53, %s2046_s15  ;;  %979 = vperm.xlu1 %1890, %v1914_v13   ;;  %v1920_v53 = vld [vmem:[%s2925_s1 + $0x18] ss:$0 sm:$0xff] }
 0x24f   : > { %v833_v36 = vpop.permute.xlu0 %832 }
 0x250   : > { %v845_v18 = vmul.f32 %v833_v36, %v2416_v12  ;;  %v846_v54 = vmul.f32 %v833_v36, %v2521_v19  ;;  %v1919_v36 = vld [vmem:[%s2925_s1 + $0x19] ss:$0 sm:$0xff] }
 0x252   : > { %v863_v59 = vrot.slane %v845_v18, 1  ;;  %v864_v60 = vrot.slane %v846_v54, 1  ;;  %v1922_v18 = vld [vmem:[%s2925_s1 + $0x1b] ss:$0 sm:$0xff]  ;;  %v1921_v54 = vld [vmem:[%s2925_s1 + $0x1c] ss:$0 sm:$0xff] }
 0x254   : > { %971 = vperm.xlu0 %1892, %v1915_v57   ;;  %v865_v61 = vsel %vm859_vm11, %v863_v59, %v864_v60  ;;  %v1924_v57 = vld [vmem:[%s2925_s1 + $0x1e] ss:$0 sm:$0xff]  ;;  %v1923_v59 = vld [vmem:[%s2925_s1 + $0x1f] ss:$0 sm:$0xff] }
 0x255   : > { %v877_v50 = vadd.f32 %v865_v61, %v811_v14 }
 0x257   : > { %v895_v62 = vpop.permute.xlu0 %894 }
 0x258   : > { %v909_v63 = vmul.f32 %v895_v62, %v2437_v26  ;;  %v910_v4 = vmul.f32 %v895_v62, %v2516_v15 }
 0x25a   : > { %v925_v5 = vrot.slane %v909_v63, 1  ;;  %v926_v6 = vrot.slane %v910_v4, 1 }
 0x25c   : > { %v927_v7 = vsel %vm859_vm11, %v925_v5, %v926_v6 }
 0x25d   : > { %937 = vrot.lane.b32.xlu2 %v927_v7, %s2046_s15 }
 0x25f   : > { %v907_v8 = vpop.permute.xlu0 %906 }
 0x260   : > { %v915_v10 = vmul.f32 %v907_v8, %v2460_v28  ;;  %v916_v11 = vmul.f32 %v907_v8, %v2533_v29 }
 0x262   : > { %v934_v16 = vrot.slane %v915_v10, 1  ;;  %v935_v20 = vrot.slane %v916_v11, 1 }
 0x264   : > { %v936_v14 = vsel %vm859_vm11, %v934_v16, %v935_v20 }
 0x265   : > { %943 = vrot.lane.b32.xlu2 %v936_v14, %s2046_s15 }
 0x26d   : > { %975 = vperm.xlu2 %1891, %v1916_v21  }
 0x2ae   : > { %v940_v23 = vpop.permute.xlu1 %939 }
 0x2af   : > { %v950_v39 = vadd.f32 %v940_v23, %v877_v50 }
 0x2b6   : > { %v968_v24 = vpop.permute.xlu1 %967 }
 0x2b7   : > { %v982_v25 = vmul.f32 %v968_v24, %v2437_v26  ;;  %v983_v17 = vmul.f32 %v968_v24, %v2516_v15  ;;  %v938_v27 = vpop.permute.xlu2 %937 }
 0x2b8   : > { %v949_v22 = vadd.f32 %v938_v27, %v876_v2 }
 0x2b9   : > { %v998_v32 = vrot.slane %v982_v25, 1  ;;  %v999_v52 = vrot.slane %v983_v17, 1 }
 0x2bb   : > { %v1000_v38 = vsel %vm859_vm11, %v998_v32, %v999_v52 }
 0x2bc   : > { %1010 = vrot.lane.b32.xlu0 %v1000_v38, %s2047_s9 }
 0x2be   : > { %v980_v40 = vpop.permute.xlu1 %979  ;;  %v942_v37 = vpop.permute.xlu0 %941 }
 0x2bf   : > { %v988_v49 = vmul.f32 %v980_v40, %v2460_v28  ;;  %v989_v46 = vmul.f32 %v980_v40, %v2533_v29  ;;  %v944_v33 = vpop.permute.xlu2 %943  ;;  %v2582_v34 = vadd.f32 %v942_v37, %v878_v51  ;;  %v1918_v51 = vld [vmem:[%s2925_s1 + $0x1d] ss:$0 sm:$0xff] }
 0x2c0   : > { %v952_v41 = vadd.f32 %v944_v33, %v879_v30  ;;  %v1917_v30 = vld [vmem:[%s2925_s1 + $0x1a] ss:$0 sm:$0xff] }
 0x2c1   : > { %v1007_v42 = vrot.slane %v988_v49, 1  ;;  %v1008_v43 = vrot.slane %v989_v46, 1 }
 0x2c3   : > { %v1009_v2 = vsel %vm859_vm11, %v1007_v42, %v1008_v43 }
 0x2c4   : > { %1016 = vrot.lane.b32.xlu0 %v1009_v2, %s2047_s9 }
 0x2c6   : > { %v972_v55 = vpop.permute.xlu0 %971 }
 0x2c7   : > { %v976_v9 = vpop.permute.xlu2 %975  ;;  %v984_v56 = vmul.f32 %v972_v55, %v2416_v12  ;;  %v985_v1 = vmul.f32 %v972_v55, %v2521_v19 }
 0x2c8   : > { %v986_v3 = vmul.f32 %v976_v9, %v2455_v31  ;;  %v987_v44 = vmul.f32 %v976_v9, %v2540_v47 }
 0x2c9   : > { %v1001_v45 = vrot.slane %v984_v56, 1  ;;  %v1002_v0 = vrot.slane %v985_v1, 1 }
 0x2ca   : > { %v1004_v13 = vrot.slane %v986_v3, 1  ;;  %v1005_v35 = vrot.slane %v987_v44, 1  ;;  %v1925_v44 = vld [vmem:[%s2925_s1 + $0x21] ss:$0 sm:$0xff] }
 0x2cb   : > { %v1003_v48 = vsel %vm859_vm11, %v1001_v45, %v1002_v0 }
 0x2cc   : > { %1048 = vperm.xlu0 %1892, %v1917_v30   ;;  %v1006_v58 = vsel %vm859_vm11, %v1004_v13, %v1005_v35  ;;  %1012 = vrot.lane.b32.xlu2 %v1003_v48, %s2047_s9 }
 0x2cd   : > { %1014 = vrot.lane.b32.xlu1 %v1006_v58, %s2047_s9 }
 0x2d4   : > { %1110 = vperm.xlu0 %1892, %v1918_v51   ;;  %1040 = vperm.xlu2 %1891, %v1920_v53  }
 0x2d5   : > { %1044 = vperm.xlu1 %1890, %v1919_v36  }
 0x2dc   : > { %1052 = vperm.xlu2 %1891, %v1922_v18   ;;  %v1926_v18 = vld [vmem:[%s2925_s1 + $0x20] ss:$0 sm:$0xff] }
 0x2dd   : > { %1106 = vperm.xlu1 %1890, %v1921_v54  }
 0x2e4   : > { %1114 = vperm.xlu2 %1891, %v1924_v57  }
 0x2e5   : > { %1118 = vperm.xlu1 %1890, %v1923_v59  }
 0x326   : > { %v1013_v60 = vpop.permute.xlu2 %1012 }
 0x327   : > { %v1023_v61 = vadd.f32 %v1013_v60, %v950_v39 }
 0x32e   : > { %v1041_v50 = vpop.permute.xlu2 %1040  ;;  %v1011_v62 = vpop.permute.xlu0 %1010 }
 0x32f   : > { %v1055_v63 = vmul.f32 %v1041_v50, %v2437_v26  ;;  %v1056_v4 = vmul.f32 %v1041_v50, %v2516_v15  ;;  %v1022_v5 = vadd.f32 %v1011_v62, %v949_v22  ;;  %v1927_v62 = vld [vmem:[%s2925_s1 + $0x23] ss:$0 sm:$0xff] }
 0x331   : > { %v1072_v6 = vrot.slane %v1055_v63, 2  ;;  %v1073_v7 = vrot.slane %v1056_v4, 2 }
 0x333   : > { %v1074_v8 = vsel %vm1071_vm12, %v1072_v6, %v1073_v7  ;;  %v1928_v6 = vld [vmem:[%s2925_s1 + $0x22] ss:$0 sm:$0xff] }
 0x334   : > { %v2621_v10 = vadd.f32 %v1074_v8, %v1022_v5 }
 0x336   : > { %v1053_v11 = vpop.permute.xlu2 %1052  ;;  %v1017_v16 = vpop.permute.xlu0 %1016 }
 0x337   : > { %v1061_v20 = vmul.f32 %v1053_v11, %v2460_v28  ;;  %v1062_v14 = vmul.f32 %v1053_v11, %v2533_v29  ;;  %v1025_v21 = vadd.f32 %v1017_v16, %v952_v41 }
 0x339   : > { %v1081_v23 = vrot.slane %v1061_v20, 2  ;;  %v1082_v39 = vrot.slane %v1062_v14, 2 }
 0x33b   : > { %v1083_v24 = vsel %vm1071_vm12, %v1081_v23, %v1082_v39 }
 0x33c   : > { %v2626_v25 = vadd.f32 %v1083_v24, %v1025_v21 }
 0x33e   : > { %v1115_v17 = vpop.permute.xlu2 %1114  ;;  %v1049_v27 = vpop.permute.xlu0 %1048 }
 0x33f   : > { %v1015_v22 = vpop.permute.xlu1 %1014  ;;  %v1125_v32 = vmul.f32 %v1115_v17, %v2455_v31  ;;  %v1126_v52 = vmul.f32 %v1115_v17, %v2540_v47  ;;  %v1059_v38 = vmul.f32 %v1049_v27, %v2455_v31  ;;  %v1060_v40 = vmul.f32 %v1049_v27, %v2540_v47 }
 0x340   : > { %v1024_v37 = vadd.f32 %v1015_v22, %v2582_v34 }
 0x341   : > { %v1143_v49 = vrot.slane %v1125_v32, 2  ;;  %v1144_v46 = vrot.slane %v1126_v52, 2  ;;  %v1078_v33 = vrot.slane %v1059_v38, 2  ;;  %v1079_v41 = vrot.slane %v1060_v40, 2 }
 0x343   : > { %v1145_v42 = vsel %vm1071_vm12, %v1143_v49, %v1144_v46  ;;  %v1080_v43 = vsel %vm1071_vm12, %v1078_v33, %v1079_v41 }
 0x344   : > { %1153 = vrot.lane.b32.xlu1 %v1145_v42, %s2046_s15  ;;  %v1090_v2 = vadd.f32 %v1080_v43, %v1024_v37  ;;  %v1929_v37 = vld [vmem:[%s2926_s2 + $0x2] ss:$0 sm:$0xff]  ;;  %v1932_v43 = vld [vmem:[%s2926_s2 + $0x3] ss:$0 sm:$0xff] }
 0x346   : > { %v1111_v55 = vpop.permute.xlu0 %1110 }
 0x347   : > { %v1045_v9 = vpop.permute.xlu1 %1044  ;;  %v1123_v56 = vmul.f32 %v1111_v55, %v2416_v12  ;;  %v1124_v1 = vmul.f32 %v1111_v55, %v2521_v19 }
 0x348   : > { %v1057_v3 = vmul.f32 %v1045_v9, %v2416_v12  ;;  %v1058_v34 = vmul.f32 %v1045_v9, %v2521_v19 }
 0x349   : > { %v1140_v30 = vrot.slane %v1123_v56, 2  ;;  %v1141_v45 = vrot.slane %v1124_v1, 2  ;;  %v1935_v56 = vld [vmem:[%s2927_s3 + $0x7] ss:$0 sm:$0xff] }
 0x34a   : > { %v1075_v0 = vrot.slane %v1057_v3, 2  ;;  %v1076_v13 = vrot.slane %v1058_v34, 2 }
 0x34b   : > { %v1142_v35 = vsel %vm1071_vm12, %v1140_v30, %v1141_v45  ;;  %v1939_v30 = vld [vmem:[%s2927_s3 + $0x8] ss:$0 sm:$0xff]  ;;  %v1940_v45 = vld [vmem:[%s2927_s3 + $0xd] ss:$0 sm:$0xff] }
 0x34c   : > { %1183 = vperm.xlu1 %1890, %v1925_v44   ;;  %1151 = vrot.lane.b32.xlu2 %v1142_v35, %s2046_s15  ;;  %v1077_v48 = vsel %vm1071_vm12, %v1075_v0, %v1076_v13  ;;  %v1938_v44 = vld [vmem:[%s2926_s2 + $0x1] ss:$0 sm:$0xff]  ;;  %v1941_v0 = vld [vmem:[%s2927_s3] ss:$0 sm:$0xff]  ;;  %v1942_v13 = vld [vmem:[%s2927_s3 + $0xb] ss:$0 sm:$0xff] }
 0x34d   : > { %v1089_v58 = vadd.f32 %v1077_v48, %v1023_v61  ;;  %v1943_v35 = vld [vmem:[%s2927_s3 + $0x10] ss:$0 sm:$0xff]  ;;  %v1944_v48 = vld [vmem:[%s2927_s3 + $0x3] ss:$0 sm:$0xff] }
 0x34f   : > { %v1107_v51 = vpop.permute.xlu1 %1106 }
 0x350   : > { %v1121_v53 = vmul.f32 %v1107_v51, %v2437_v26  ;;  %v1122_v36 = vmul.f32 %v1107_v51, %v2516_v15  ;;  %v1946_v51 = vld [vmem:[%s2927_s3 + $0x13] ss:$0 sm:$0xff] }
 0x352   : > { %v1137_v54 = vrot.slane %v1121_v53, 2  ;;  %v1138_v57 = vrot.slane %v1122_v36, 2  ;;  %v1947_v53 = vld [vmem:[%s2927_s3 + $0x6] ss:$0 sm:$0xff]  ;;  %v1948_v36 = vld [vmem:[%s2927_s3 + $0x11] ss:$0 sm:$0xff] }
 0x354   : > { %v1139_v59 = vsel %vm1071_vm12, %v1137_v54, %v1138_v57  ;;  %1179 = vperm.xlu2 %1891, %v1926_v18   ;;  %v1949_v18 = vld [vmem:[%s2927_s3 + $0x16] ss:$0 sm:$0xff]  ;;  %v1950_v54 = vld [vmem:[%s2927_s3 + $0x9] ss:$0 sm:$0xff]  ;;  %v1951_v57 = vld [vmem:[%s2927_s3 + $0x14] ss:$0 sm:$0xff] }
 0x355   : > { %1149 = vrot.lane.b32.xlu0 %v1139_v59, %s2046_s15  ;;  %v1952_v59 = vld [vmem:[%s2927_s3 + $0x19] ss:$0 sm:$0xff] }
 0x357   : > { %v1119_v60 = vpop.permute.xlu1 %1118 }
 0x358   : > { %v1127_v50 = vmul.f32 %v1119_v60, %v2460_v28  ;;  %v1128_v61 = vmul.f32 %v1119_v60, %v2533_v29  ;;  %v1953_v60 = vld [vmem:[%s2927_s3 + $0xc] ss:$0 sm:$0xff] }
 0x35a   : > { %v1146_v63 = vrot.slane %v1127_v50, 2  ;;  %v1147_v4 = vrot.slane %v1128_v61, 2  ;;  %v1954_v50 = vld [vmem:[%s2927_s3 + $0x17] ss:$0 sm:$0xff]  ;;  %v1955_v61 = vld [vmem:[%s2927_s3 + $0x1c] ss:$0 sm:$0xff] }
 0x35c   : > { %v1148_v5 = vsel %vm1071_vm12, %v1146_v63, %v1147_v4  ;;  %1191 = vperm.xlu2 %1891, %v1927_v62   ;;  %v1956_v62 = vld [vmem:[%s2927_s3 + $0xf] ss:$0 sm:$0xff]  ;;  %v1957_v63 = vld [vmem:[%s2927_s3 + $0x1a] ss:$0 sm:$0xff]  ;;  %v1958_v4 = vld [vmem:[%s2927_s3 + $0x1f] ss:$0 sm:$0xff] }
 0x35d   : > { %1155 = vrot.lane.b32.xlu0 %v1148_v5, %s2046_s15  ;;  %v1959_v5 = vld [vmem:[%s2927_s3 + $0x12] ss:$0 sm:$0xff]  ;;  %s242_s15 = sand.u32 1, %s2035_s22  }
 0x35e   : > { %s1780_s20 = sshll.u32 %s242_s15, 6  ;;  %s1699_s25 = scalar_lea.sflag [#allocation3], %s242_s15 }
 0x35f   : > { %s2872_s26 = scalar_lea.vmem [#allocation2], %s1780_s20 }
 0x360   : > { %s1711_s12 = sshll.u32 %s2872_s26, 4  ;;  %s1712_s12 = int_to_ptr.vmem [resolvable:$true] %s1711_s12 }
 0x365   : > { %1187 = vperm.xlu0 %1892, %v1928_v6   ;;  %v1960_v6 = vld [vmem:[%s2927_s3 + $0x1d] ss:$0 sm:$0xff] }
 0x3a6   : > { %v1152_v7 = vpop.permute.xlu2 %1151 }
 0x3a7   : > { %v2663_v8 = vadd.f32 %v1152_v7, %v1089_v58  ;;  %v1945_v58 = vld [vmem:[%s2927_s3 + $0xe] ss:$0 sm:$0xff]  ;;  %v1961_v7 = vld [vmem:[%s2928_s4 + $0x2] ss:$0 sm:$0xff] }
 0x3ae   : > { %v1180_v11 = vpop.permute.xlu2 %1179 }
 0x3af   : > { %v1194_v16 = vmul.f32 %v1180_v11, %v2437_v26  ;;  %v1195_v20 = vmul.f32 %v1180_v11, %v2516_v15  ;;  %v1962_v11 = vld [vmem:[%s2927_s3 + $0x15] ss:$0 sm:$0xff] }
 0x3b1   : > { %v1210_v14 = vrot.slane %v1194_v16, 2  ;;  %v1211_v21 = vrot.slane %v1195_v20, 2 }
 0x3b3   : > { %v1212_v23 = vsel %vm1071_vm12, %v1210_v14, %v1211_v21  ;;  %v1963_v14 = vld [vmem:[%s2928_s4] ss:$0 sm:$0xff]  ;;  %v1964_v21 = vld [vmem:[%s2928_s4 + $0x5] ss:$0 sm:$0xff] }
 0x3b4   : > { %1222 = vrot.lane.b32.xlu1 %v1212_v23, %s2047_s9  ;;  %v1965_v23 = vld [vmem:[%s2927_s3 + $0x18] ss:$0 sm:$0xff] }
 0x3b6   : > { %v1154_v39 = vpop.permute.xlu1 %1153  ;;  %v1192_v24 = vpop.permute.xlu2 %1191 }
 0x3b7   : > { %v2669_v17 = vadd.f32 %v1154_v39, %v1090_v2  ;;  %v1200_v27 = vmul.f32 %v1192_v24, %v2460_v28  ;;  %v1201_v22 = vmul.f32 %v1192_v24, %v2533_v29 }
 0x3b9   : > { %v1219_v32 = vrot.slane %v1200_v27, 2  ;;  %v1220_v52 = vrot.slane %v1201_v22, 2  ;;  %v1966_v27 = vld [vmem:[%s2928_s4 + $0x3] ss:$0 sm:$0xff]  ;;  %v1967_v22 = vld [vmem:[%s2929_s5] ss:$0 sm:$0xff] }
 0x3bb   : > { %v1221_v26 = vsel %vm1071_vm12, %v1219_v32, %v1220_v52  ;;  %v1968_v32 = vld [vmem:[%s2927_s3 + $0x1b] ss:$0 sm:$0xff] }
 0x3bc   : > { %1228 = vrot.lane.b32.xlu1 %v1221_v26, %s2047_s9 }
 0x3be   : > { %v1184_v15 = vpop.permute.xlu1 %1183 }
 0x3bf   : > { %v1196_v38 = vmul.f32 %v1184_v15, %v2416_v12  ;;  %v1197_v40 = vmul.f32 %v1184_v15, %v2521_v19  ;;  %v1930_v12 = vld [vmem:[%s2926_s2] ss:$0 sm:$0xff]  ;;  %v1931_v19 = vld [vmem:[%s2927_s3 + $0x1] ss:$0 sm:$0xff] }
 0x3c1   : > { %v1213_v49 = vrot.slane %v1196_v38, 2  ;;  %v1214_v46 = vrot.slane %v1197_v40, 2 }
 0x3c3   : > { %v1215_v28 = vsel %vm1071_vm12, %v1213_v49, %v1214_v46  ;;  %v1970_v49 = vld [vmem:[%s2929_s5 + $0x3] ss:$0 sm:$0xff]  ;;  %v1971_v46 = vld [vmem:[%s2927_s3 + $0x1e] ss:$0 sm:$0xff] }
 0x3c4   : > { %1224 = vrot.lane.b32.xlu0 %v1215_v28, %s2047_s9  ;;  %1259 = vperm.xlu1 %1890, %v1929_v37   ;;  %v1969_v37 = vld [vmem:[%s2928_s4 + $0x6] ss:$0 sm:$0xff] }
 0x3c7   : > { %v1150_v29 = vpop.permute.xlu0 %1149 }
 0x3c8   : > { %v2683_v33 = vadd.f32 %v1150_v29, %v2621_v10  ;;  %v1933_v10 = vld [vmem:[%s2927_s3 + $0x4] ss:$0 sm:$0xff] }
 0x3cc   : > { %1251 = vperm.xlu0 %1892, %v1930_v12   ;;  %1299 = vperm.xlu1 %1890, %v1931_v19   ;;  %v1972_v19 = vld [vmem:[%s2929_s5 + $0x1] ss:$0 sm:$0xff] }
 0x3cf   : > { %v1156_v41 = vpop.permute.xlu0 %1155 }
 0x3d0   : > { %v2692_v42 = vadd.f32 %v1156_v41, %v2626_v25  ;;  %v1934_v25 = vld [vmem:[%s2927_s3 + $0x2] ss:$0 sm:$0xff]  ;;  %v1973_v41 = vld [vmem:[%s2929_s5 + $0x6] ss:$0 sm:$0xff] }
 0x3d4   : > { %1263 = vperm.xlu0 %1892, %v1932_v43   ;;  %1311 = vperm.xlu1 %1890, %v1933_v10  }
 0x3d7   : > { %v1188_v2 = vpop.permute.xlu0 %1187 }
 0x3d8   : > { %v1198_v55 = vmul.f32 %v1188_v2, %v2455_v31  ;;  %v1199_v9 = vmul.f32 %v1188_v2, %v2540_v47  ;;  %v1936_v31 = vld [vmem:[%s2927_s3 + $0x5] ss:$0 sm:$0xff]  ;;  %v1937_v47 = vld [vmem:[%s2927_s3 + $0xa] ss:$0 sm:$0xff] }
 0x3da   : > { %v1216_v1 = vrot.slane %v1198_v55, 2  ;;  %v1217_v3 = vrot.slane %v1199_v9, 2 }
 0x3dc   : > { %1303 = vperm.xlu0 %1892, %v1934_v25   ;;  %1323 = vperm.xlu1 %1890, %v1935_v56   ;;  %v1218_v34 = vsel %vm1071_vm12, %v1216_v1, %v1217_v3  ;;  %v1975_v1 = vld [vmem:[%s2929_s5 + $0x4] ss:$0 sm:$0xff] }
 0x3dd   : > { %1226 = vrot.lane.b32.xlu2 %v1218_v34, %s2047_s9  ;;  %v1976_v3 = vld [vmem:[%s2928_s4 + $0x4] ss:$0 sm:$0xff]  ;;  %s1713_s9 = sshll.u32 %s1710_s11, 4  ;;  %s1714_s9 = int_to_ptr.hbm [resolvable:$true] %s1713_s9 }
 0x3de   : > { %s1995_s13 = sshra.s32 %s1714_s9, 4  ;;  %s1996_s13 = int_to_ptr.hbm [resolvable:$true] %s1995_s13 }
 0x3df   : > { %s1997_s14 = scalar_lea.hbm %s1996_s13, 64  ;;  %p2002_p0 = scmp.lt.s32.totalorder %s1996_s13, %s2930_s6 }
 0x3e0   : > { %p1998_p11 = scmp.ne.s32.totalorder %s1996_s13, %s1997_s14  ;;  %p2003_p1 = scmp.lt.s32.totalorder %s2001_s18, %s1997_s14 }
 0x3e2   : > { %p1999_p12 = pnand %p1998_p11, %p2123_p5  ;;  %p2004_p2 = por %p2003_p1, %p2002_p0 }
 0x3e4   : > { %1315 = vperm.xlu0 %1892, %v1936_v31   ;;  %1368 = vperm.xlu1 %1890, %v1937_v47   ;;  %p2000_p13 = pneg %p1999_p12 }
 0x3e5   : > { %1255 = vperm.xlu2 %1891, %v1938_v44  }
 0x3e6   : > { %p2005_p3 = pnand %p2004_p2, %p2000_p13 }
 0x3ec   : > { %1360 = vperm.xlu0 %1892, %v1939_v30   ;;  %1380 = vperm.xlu1 %1890, %v1940_v45  }
 0x3ed   : > { %1295 = vperm.xlu2 %1891, %v1941_v0   ;;  %v1977_v0 = vld [vmem:[%s2929_s5 + $0x7] ss:$0 sm:$0xff] }
 0x3f4   : > { %1372 = vperm.xlu0 %1892, %v1942_v13   ;;  %1433 = vperm.xlu1 %1890, %v1943_v35   ;;  %v1978_v13 = vld [vmem:[%s2928_s4 + $0x7] ss:$0 sm:$0xff] }
 0x3f5   : > { %1307 = vperm.xlu2 %1891, %v1944_v48  }
 0x3fc   : > { %1384 = vperm.xlu0 %1892, %v1945_v58   ;;  %1445 = vperm.xlu1 %1890, %v1946_v51  }
 0x3fd   : > { %1319 = vperm.xlu2 %1891, %v1947_v53  }
 0x404   : > { %1437 = vperm.xlu0 %1892, %v1948_v36   ;;  %1457 = vperm.xlu1 %1890, %v1949_v18  }
 0x405   : > { %1364 = vperm.xlu2 %1891, %v1950_v54   ;;  %v1979_v54 = vld [vmem:[%s2929_s5 + $0x2] ss:$0 sm:$0xff] }
 0x40c   : > { %1449 = vperm.xlu0 %1892, %v1951_v57   ;;  %1510 = vperm.xlu1 %1890, %v1952_v59  }
 0x40d   : > { %1376 = vperm.xlu2 %1891, %v1953_v60  }
 0x414   : > { %1461 = vperm.xlu0 %1892, %v1954_v50   ;;  %1522 = vperm.xlu1 %1890, %v1955_v61  }
 0x415   : > { %1388 = vperm.xlu2 %1891, %v1956_v62  }
 0x41c   : > { %1514 = vperm.xlu0 %1892, %v1957_v63   ;;  %1534 = vperm.xlu1 %1890, %v1958_v4  }
 0x41d   : > { %1441 = vperm.xlu2 %1891, %v1959_v5   ;;  %v1980_v5 = vld [vmem:[%s2929_s5 + $0x5] ss:$0 sm:$0xff] }
 0x424   : > { %1526 = vperm.xlu0 %1892, %v1960_v6   ;;  %1586 = vperm.xlu1 %1890, %v1961_v7  }
 0x425   : > { %1453 = vperm.xlu2 %1891, %v1962_v11  }
 0x426   : > { %v1223_v16 = vpop.permute.xlu1 %1222 }
 0x427   : > { %v1234_v20 = vadd.f32 %v1223_v16, %v2683_v33 }
 0x42c   : > { %1578 = vperm.xlu0 %1892, %v1963_v14   ;;  %1598 = vperm.xlu1 %1890, %v1964_v21  }
 0x42d   : > { %1506 = vperm.xlu2 %1891, %v1965_v23  }
 0x42e   : > { %v1229_v39 = vpop.permute.xlu1 %1228 }
 0x42f   : > { %v1237_v24 = vadd.f32 %v1229_v39, %v2692_v42  ;;  %v1974_v42 = vld [vmem:[%s2928_s4 + $0x1] ss:$0 sm:$0xff] }
 0x434   : > { %1590 = vperm.xlu0 %1892, %v1966_v27   ;;  %1642 = vperm.xlu1 %1890, %v1967_v22  }
 0x435   : > { %1518 = vperm.xlu2 %1891, %v1968_v32  }
 0x436   : > { %v1260_v52 = vpop.permute.xlu1 %1259  ;;  %v1225_v26 = vpop.permute.xlu0 %1224 }
 0x437   : > { %v1227_v15 = vpop.permute.xlu2 %1226  ;;  %v1235_v38 = vadd.f32 %v1225_v26, %v2663_v8 }
 0x438   : > { %v1236_v40 = vadd.f32 %v1227_v15, %v2669_v17 }
 0x43a   : > { %v2822_v28 = vadd.f32 %v1260_v52, %v1236_v40 }
 0x43c   : > { %1602 = vperm.xlu0 %1892, %v1969_v37   ;;  %1654 = vperm.xlu1 %1890, %v1970_v49  }
 0x43d   : > { %1530 = vperm.xlu2 %1891, %v1971_v46  }
 0x43e   : > { %v1300_v8 = vpop.permute.xlu1 %1299  ;;  %v1252_v29 = vpop.permute.xlu0 %1251 }
 0x43f   : > { %v1256_v17 = vpop.permute.xlu2 %1255  ;;  %v1266_v33 = vadd.f32 %v1252_v29, %v1234_v20 }
 0x440   : > { %v1267_v12 = vadd.f32 %v1256_v17, %v1235_v38 }
 0x441   : > { %v1327_v43 = vmul.f32 %v1300_v8, %v1266_v33 }
 0x444   : > { %1646 = vperm.xlu0 %1892, %v1972_v19   ;;  %1666 = vperm.xlu1 %1890, %v1973_v41  }
 0x445   : > { %1582 = vperm.xlu2 %1891, %v1974_v42  }
 0x446   : > { %v1312_v10 = vpop.permute.xlu1 %1311  ;;  %v1264_v2 = vpop.permute.xlu0 %1263 }
 0x447   : > { %v1330_v55 = vmul.f32 %v1312_v10, %v1266_v33  ;;  %v1296_v9 = vpop.permute.xlu2 %1295  ;;  %v2833_v25 = vadd.f32 %v1264_v2, %v1237_v24 }
 0x448   : > { %v1326_v56 = vmul.f32 %v1296_v9, %v1266_v33 }
 0x44c   : > { %1658 = vperm.xlu0 %1892, %v1975_v1  }
 0x44d   : > { %1594 = vperm.xlu2 %1891, %v1976_v3  }
 0x44e   : > { %v1324_v34 = vpop.permute.xlu1 %1323  ;;  %v1304_v31 = vpop.permute.xlu0 %1303 }
 0x44f   : > { %v1333_v47 = vmul.f32 %v1324_v34, %v1266_v33  ;;  %v1308_v44 = vpop.permute.xlu2 %1307  ;;  %v1328_v30 = vmul.f32 %v1304_v31, %v1266_v33 }
 0x450   : > { %v1329_v45 = vmul.f32 %v1308_v44, %v1266_v33 }
 0x454   : > { %1670 = vperm.xlu0 %1892, %v1977_v0  }
 0x455   : > { %1606 = vperm.xlu2 %1891, %v1978_v13  }
 0x456   : > { %v1369_v35 = vpop.permute.xlu1 %1368  ;;  %v1316_v48 = vpop.permute.xlu0 %1315 }
 0x457   : > { %v1393_v58 = vmul.f32 %v1369_v35, %v1267_v12  ;;  %v1320_v51 = vpop.permute.xlu2 %1319  ;;  %v1331_v53 = vmul.f32 %v1316_v48, %v1266_v33 }
 0x458   : > { %v1332_v36 = vmul.f32 %v1320_v51, %v1266_v33 }
 0x459   : > { %v1401_v18 = vadd.f32 %v1393_v58, %v1328_v30 }
 0x45d   : > { %1650 = vperm.xlu2 %1891, %v1979_v54  }
 0x45e   : > { %v1381_v57 = vpop.permute.xlu1 %1380  ;;  %v1361_v59 = vpop.permute.xlu0 %1360 }
 0x45f   : > { %v1396_v60 = vmul.f32 %v1381_v57, %v1267_v12  ;;  %v1365_v50 = vpop.permute.xlu2 %1364  ;;  %v1391_v61 = vmul.f32 %v1361_v59, %v1267_v12 }
 0x460   : > { %v1392_v62 = vmul.f32 %v1365_v50, %v1267_v12 }
 0x461   : > { %v1404_v63 = vadd.f32 %v1396_v60, %v1331_v53  ;;  %v1399_v4 = vadd.f32 %v1391_v61, %v1326_v56 }
 0x462   : > { %v1400_v6 = vadd.f32 %v1392_v62, %v1327_v43 }
 0x465   : > { %1662 = vperm.xlu2 %1891, %v1980_v5  }
 0x466   : > { %v1434_v7 = vpop.permute.xlu1 %1433  ;;  %v1373_v11 = vpop.permute.xlu0 %1372 }
 0x467   : > { %v1464_v16 = vmul.f32 %v1434_v7, %v2822_v28  ;;  %v1377_v20 = vpop.permute.xlu2 %1376  ;;  %v1394_v14 = vmul.f32 %v1373_v11, %v1267_v12 }
 0x468   : > { %v1395_v21 = vmul.f32 %v1377_v20, %v1267_v12 }
 0x469   : > { %v1472_v23 = vadd.f32 %v1464_v16, %v1399_v4  ;;  %v1402_v39 = vadd.f32 %v1394_v14, %v1329_v45 }
 0x46a   : > { %v1403_v24 = vadd.f32 %v1395_v21, %v1330_v55 }
 0x46e   : > { %v1446_v27 = vpop.permute.xlu1 %1445  ;;  %v1385_v22 = vpop.permute.xlu0 %1384 }
 0x46f   : > { %v1467_v32 = vmul.f32 %v1446_v27, %v2822_v28  ;;  %v1389_v52 = vpop.permute.xlu2 %1388  ;;  %v1397_v26 = vmul.f32 %v1385_v22, %v1267_v12 }
 0x470   : > { %v1398_v15 = vmul.f32 %v1389_v52, %v1267_v12 }
 0x471   : > { %v1475_v38 = vadd.f32 %v1467_v32, %v1402_v39  ;;  %v1405_v40 = vadd.f32 %v1397_v26, %v1332_v36 }
 0x472   : > { %v1406_v37 = vadd.f32 %v1398_v15, %v1333_v47 }
 0x476   : > { %v1458_v49 = vpop.permute.xlu1 %1457  ;;  %v1438_v46 = vpop.permute.xlu0 %1437 }
 0x477   : > { %v1470_v8 = vmul.f32 %v1458_v49, %v2822_v28  ;;  %v1442_v29 = vpop.permute.xlu2 %1441  ;;  %v1465_v17 = vmul.f32 %v1438_v46, %v2822_v28 }
 0x478   : > { %v1466_v33 = vmul.f32 %v1442_v29, %v2822_v28 }
 0x479   : > { %v1478_v19 = vadd.f32 %v1470_v8, %v1405_v40  ;;  %v1473_v41 = vadd.f32 %v1465_v17, %v1400_v6 }
 0x47a   : > { %v1474_v42 = vadd.f32 %v1466_v33, %v1401_v18 }
 0x47e   : > { %v1511_v43 = vpop.permute.xlu1 %1510  ;;  %v1450_v10 = vpop.permute.xlu0 %1449 }
 0x47f   : > { %v1538_v2 = vmul.f32 %v1511_v43, %v2833_v25  ;;  %v1454_v12 = vpop.permute.xlu2 %1453  ;;  %v1468_v55 = vmul.f32 %v1450_v10, %v2822_v28 }
 0x480   : > { %v1469_v9 = vmul.f32 %v1454_v12, %v2822_v28 }
 0x481   : > { %v1476_v56 = vadd.f32 %v1468_v55, %v1403_v24  ;;  %v1546_v1 = vadd.f32 %v1538_v2, %v1473_v41 }
 0x482   : > { %v1477_v3 = vadd.f32 %v1469_v9, %v1404_v63 }
 0x486   : > { %v1523_v34 = vpop.permute.xlu1 %1522  ;;  %v1462_v31 = vpop.permute.xlu0 %1461 }
 0x487   : > { %v1541_v47 = vmul.f32 %v1523_v34, %v2833_v25  ;;  %v1507_v44 = vpop.permute.xlu2 %1506  ;;  %v1471_v30 = vmul.f32 %v1462_v31, %v2822_v28 }
 0x488   : > { %v1537_v45 = vmul.f32 %v1507_v44, %v2833_v25 }
 0x489   : > { %v1479_v0 = vadd.f32 %v1471_v30, %v1406_v37  ;;  %v1549_v13 = vadd.f32 %v1541_v47, %v1476_v56 }
 0x48a   : > { %v1545_v35 = vadd.f32 %v1537_v45, %v1472_v23 }
 0x48e   : > { %v1535_v48 = vpop.permute.xlu1 %1534  ;;  %v1515_v58 = vpop.permute.xlu0 %1514 }
 0x48f   : > { %v1544_v51 = vmul.f32 %v1535_v48, %v2833_v25  ;;  %v1519_v53 = vpop.permute.xlu2 %1518  ;;  %v1539_v36 = vmul.f32 %v1515_v58, %v2833_v25 }
 0x490   : > { %v1540_v18 = vmul.f32 %v1519_v53, %v2833_v25 }
 0x491   : > { %v1547_v54 = vadd.f32 %v1539_v36, %v1474_v42  ;;  %v1552_v57 = vadd.f32 %v1544_v51, %v1479_v0 }
 0x492   : > { %v1548_v59 = vadd.f32 %v1540_v18, %v1475_v38 }
 0x496   : > { %v1587_v28 = vpop.permute.xlu1 %1586  ;;  %v1527_v60 = vpop.permute.xlu0 %1526 }
 0x497   : > { %v1531_v50 = vpop.permute.xlu2 %1530  ;;  %v1542_v61 = vmul.f32 %v1527_v60, %v2833_v25  ;;  %v1611_v15 = vmul.f32 %v1587_v28, %v1547_v54 }
 0x498   : > { %v1543_v62 = vmul.f32 %v1531_v50, %v2833_v25 }
 0x499   : > { %v1550_v63 = vadd.f32 %v1542_v61, %v1477_v3 }
 0x49a   : > { %v1551_v4 = vadd.f32 %v1543_v62, %v1478_v19 }
 0x49e   : > { %v1599_v5 = vpop.permute.xlu1 %1598  ;;  %v1579_v6 = vpop.permute.xlu0 %1578 }
 0x49f   : > { %v1583_v7 = vpop.permute.xlu2 %1582  ;;  %v1609_v11 = vmul.f32 %v1579_v6, %v1545_v35  ;;  %v1614_v41 = vmul.f32 %v1599_v5, %v1550_v63 }
 0x4a0   : > { %v1610_v52 = vmul.f32 %v1583_v7, %v1546_v1 }
 0x4a6   : > { %v1643_v16 = vpop.permute.xlu1 %1642  ;;  %v1591_v20 = vpop.permute.xlu0 %1590 }
 0x4a7   : > { %v1673_v14 = vadd.f32 %v1643_v16, %v1609_v11  ;;  %v1595_v21 = vpop.permute.xlu2 %1594  ;;  %v1612_v25 = vmul.f32 %v1591_v20, %v1548_v59 }
 0x4a8   : > { %v1613_v19 = vmul.f32 %v1595_v21, %v1549_v13 }
 0x4a9   : > { %v1681_v23 = vmax.f32 %v1673_v14, 0.0 }
 0x4ab   : > { %1690 = vst.msk [vmem:[%s2872_s26] sm:$0xff] %vm1689_vm13, %v1681_v23 }
 0x4ae   : > { %v1655_v39 = vpop.permute.xlu1 %1654  ;;  %v1603_v24 = vpop.permute.xlu0 %1602 }
 0x4af   : > { %v1676_v27 = vadd.f32 %v1655_v39, %v1612_v25  ;;  %v1607_v22 = vpop.permute.xlu2 %1606  ;;  %v1615_v26 = vmul.f32 %v1603_v24, %v1551_v4 }
 0x4b0   : > { %v1616_v9 = vmul.f32 %v1607_v22, %v1552_v57 }
 0x4b1   : > { %v1684_v32 = vmax.f32 %v1676_v27, 0.0 }
 0x4b3   : > { %1693 = vst.msk [vmem:[%s2872_s26 + $0x18] sm:$0xff] %vm1689_vm13, %v1684_v32 }
 0x4b6   : > { %v1667_v38 = vpop.permute.xlu1 %1666  ;;  %v1647_v40 = vpop.permute.xlu0 %1646 }
 0x4b7   : > { %v1679_v37 = vadd.f32 %v1667_v38, %v1615_v26  ;;  %v1651_v49 = vpop.permute.xlu2 %1650  ;;  %v1674_v46 = vadd.f32 %v1647_v40, %v1610_v52 }
 0x4b8   : > { %v1675_v8 = vadd.f32 %v1651_v49, %v1611_v15 }
 0x4b9   : > { %v1687_v29 = vmax.f32 %v1679_v37, 0.0  ;;  %v1682_v17 = vmax.f32 %v1674_v46, 0.0 }
 0x4ba   : > { %v1683_v33 = vmax.f32 %v1675_v8, 0.0 }
 0x4bb   : > { %1696 = vst.msk [vmem:[%s2872_s26 + $0x30] sm:$0xff] %vm1689_vm13, %v1687_v29 }
 0x4bc   : > { %1692 = vst.msk [vmem:[%s2872_s26 + $0x10] sm:$0xff] %vm1689_vm13, %v1683_v33 }
 0x4bd   : > { %1691 = vst.msk [vmem:[%s2872_s26 + $0x8] sm:$0xff] %vm1689_vm13, %v1682_v17 }
 0x4be   : > { %v1659_v42 = vpop.permute.xlu0 %1658 }
 0x4bf   : > { %v1663_v43 = vpop.permute.xlu2 %1662  ;;  %v1677_v10 = vadd.f32 %v1659_v42, %v1613_v19 }
 0x4c0   : > { %v1678_v2 = vadd.f32 %v1663_v43, %v1614_v41 }
 0x4c1   : > { %v1685_v12 = vmax.f32 %v1677_v10, 0.0 }
 0x4c2   : > { %v1686_v55 = vmax.f32 %v1678_v2, 0.0 }
 0x4c3   : > { %1694 = vst.msk [vmem:[%s2872_s26 + $0x20] sm:$0xff] %vm1689_vm13, %v1685_v12 }
 0x4c4   : > { %1695 = vst.msk [vmem:[%s2872_s26 + $0x28] sm:$0xff] %vm1689_vm13, %v1686_v55 }
 0x4c6   : > { %v1671_v56 = vpop.permute.xlu0 %1670 }
 0x4c7   : > { %v1680_v1 = vadd.f32 %v1671_v56, %v1616_v9 }
 0x4c9   : > { %v1688_v3 = vmax.f32 %v1680_v1, 0.0 }
 0x4cb   : > { %1697 = vst.msk [vmem:[%s2872_s26 + $0x38] sm:$0xff] %vm1689_vm13, %v1688_v3 }
 0x4cc   : > { %2008 = shalt.err (!%p2005_p3)
}
 0x4cd   : > { %s2048_s15 = smov 128   ;;  %s2049_s26 = smov 8  }
 0x4ce   : > { %1846 = dma.vmem_to_hbm [thread:$0]  (%p2123_p5), %s1712_s12, 1024, %s1714_s9, %s1699_s25, %s2048_s15, %s2048_s15, %s2049_s26  }
 0x4cf PF: > { %p1852_p4 = scmp.ge.s32.totalorder %s2043_s24, 2  ;;  %s1728_s28 = sand.u32 1, %s2031_s21  }
 0x4d0   : > { %s1729_s29 = scalar_lea.sflag [#allocation3], %s1728_s28 }
 0x4d1   : > { %p1849_p7 = pnand %p1852_p4, %p2127_p6 }
 0x4d3   : > { %p1850_p8 = pneg %p1849_p7 }
 0x4d5   : > { %2026 = dma.done.wait (%p1850_p8), %s1729_s29, 1024  }
 0x4d6   : > { %2028 = vsyncadd (%p1850_p8), %s1729_s29, 4294966272  ;;  %p16_p9 = scmp.ge.s32.totalorder %s2110_s27, 4   ;;  %s2933_s21 = smov %s2035_s22 }
 0x4d7   : > { %s2934_s22 = smov %s2039_s23  ;;  %s2935_s23 = smov %s2121_s30 }
 0x4d8   : > { %s2936_s24 = smov %s2110_s27  ;;  %18 = sbr.rel (!%p16_p9) target bundleno = 3 (0x3), region = 90 }
 0x4dd   :  { %1735 = vsyncpa [#allocation3], 1 }
 0x4de   :  { %1737 = vsyncpa [#allocation3 + $0x1], 1 }

</bundles_post_ra>
